<compile_context>
chip_gen: v6e
topology: v6e:2x2x1
jax: 0.10.0
libtpu: 0.0.40
codegen_flags: <defaults>
</compile_context>

<pallas_src>
import jax
import jax.numpy as jnp
from jax.experimental import pallas as pl
from jax.experimental.pallas import tpu as pltpu

_LANE = 128
_SUBLANE = 8


def _round_up(n, m):
    return ((n + m - 1) // m) * m


def _num_parallel_tensorcores():
    """Best-effort count of TCs a 'parallel' grid axis shards over.

    v5e/v6e present 1 TensorCore per chip; v7x presents 2.  Field names vary
    across runtimes, so probe defensively and fall back to 1 (always correct).
    """
    try:
        info = pltpu.get_tpu_info()
        for name in ("num_cores", "core_count", "tensorcore_count",
                     "num_tensorcores"):
            v = getattr(info, name, None)
            if v:
                return max(1, min(2, int(v)))
    except Exception:
        pass
    return 1


def _vmem_capacity_bytes():
    """Physical VMEM capacity; conservative 64 MiB fallback (v7x per-TC)."""
    try:
        cap = int(pltpu.get_tpu_info().vmem_capacity_bytes)
        if cap > 0:
            return cap
    except Exception:
        pass
    return 64 << 20


def _make_mlp_kernel(num_linear, compute_dtype):
    """Kernel computing num_linear stacked Linear layers on one batch tile.

    Refs layout: (x_ref, w0, b0, ..., w_{L-1}, b_{L-1}, o_ref).  ReLU after
    every layer except the last.  MXU inputs are `compute_dtype`, accumulation
    + bias add + ReLU are f32 (v5e-safe); the cast back to compute_dtype is
    fused into the layer epilogue so the inter-layer activation stays narrow.
    """

    def kernel(*refs):
        x_ref = refs[0]
        o_ref = refs[-1]
        params = refs[1:-1]

        h = x_ref[...]  # already compute_dtype
        for li in range(num_linear):
            w_ref = params[2 * li]
            b_ref = params[2 * li + 1]
            acc = jnp.dot(h, w_ref[...], preferred_element_type=jnp.float32)
            acc = acc + b_ref[...]                      # f32 bias add (VPU)
            if li != num_linear - 1:
                h = jnp.maximum(acc, 0.0).astype(compute_dtype)  # fused cast
            else:
                h = acc                                 # last layer: no ReLU
        o_ref[...] = h.astype(o_ref.dtype)

    return kernel


def prepare_encoder_fc_params(weights, biases, weight_dtype=jnp.bfloat16):
    """Pad + cast parameters ONCE (hoisted out of the per-call hot path).

    weights: list of (in_dim, out_dim) arrays (transpose of PyTorch layout)
    biases:  list of (out_dim,) or (1, out_dim) arrays
    Returns (w_padded_tuple, b_padded_tuple) with every feature dim rounded up
    to a multiple of 128 lanes.  Use weight_dtype=jnp.float32 for exact parity
    with the PyTorch f32 Linear layers (bf16 is the fast default).
    """
    dims = [weights[0].shape[0]] + [w.shape[1] for w in weights]
    pdims = [_round_up(d, _LANE) for d in dims]
    w_ps, b_ps = [], []
    for li, (w, b) in enumerate(zip(weights, biases)):
        din, dout = w.shape
        w_p = jnp.pad(jnp.asarray(w, weight_dtype),
                      ((0, pdims[li] - din), (0, pdims[li + 1] - dout)))
        b2 = jnp.asarray(b, jnp.float32).reshape(1, dout)
        b_p = jnp.pad(b2, ((0, 0), (0, pdims[li + 1] - dout)))
        w_ps.append(w_p)
        b_ps.append(b_p)
    return tuple(w_ps), tuple(b_ps)


def encoder_fc_pallas(x, w_ps, b_ps, *, out_dim, max_block_batch=512,
                      out_dtype=jnp.float32):
    """Full MLP forward in a single batch-gridded Pallas kernel.

    x:       (B, in_dim)
    w_ps:    tuple of padded (K_pad, N_pad) weights from prepare_encoder_fc_params
    b_ps:    tuple of padded (1, N_pad) f32 biases
    out_dim: un-padded output feature count (for the final slice)
    out_dtype: dtype of the padded output the kernel writes; jnp.bfloat16
      halves the 128-lane-padded HBM writeback if downstream tolerates it.
    """
    num_linear = len(w_ps)
    B, in_dim = x.shape
    compute_dtype = w_ps[0].dtype
    pdims = [w_ps[0].shape[0]] + [w.shape[1] for w in w_ps]

    # Batch tile: one grid step per TensorCore (1 on v5e/v6e => single big
    # tile; 2 on v7x so both TCs get work), sublane-aligned, capped at 512.
    n_cores = _num_parallel_tensorcores()
    tb = _round_up(pl.cdiv(_round_up(B, _SUBLANE), n_cores), _SUBLANE)
    tb = min(tb, max_block_batch)
    b_pad = _round_up(B, tb)
    grid = (b_pad // tb,)

    # Only x needs per-call padding; parameters were padded once up front.
    x_p = jnp.pad(x.astype(compute_dtype),
                  ((0, b_pad - B), (0, pdims[0] - in_dim)))

    kernel = _make_mlp_kernel(num_linear, compute_dtype)

    args = [x_p]
    for w_p, b_p in zip(w_ps, b_ps):
        args.append(w_p)
        args.append(b_p)

    out_specs = pl.BlockSpec((tb, pdims[-1]), lambda i: (i, 0))
    out_shape = jax.ShapeDtypeStruct((b_pad, pdims[-1]), out_dtype)

    # VMEM budget: resident params (x2 in case the Buffered(1) fallback kicks
    # in) + double-buffered x/out tiles + activation headroom, capped at 0.9x
    # physical VMEM (64 MiB/TC on v7x, 128 MiB on v5e/v6e).
    in_itemsize = jnp.dtype(compute_dtype).itemsize
    out_itemsize = jnp.dtype(out_dtype).itemsize
    bytes_params = sum(int(a.size) * a.dtype.itemsize for a in args[1:])
    bytes_io = 2 * tb * pdims[0] * in_itemsize + 2 * tb * pdims[-1] * out_itemsize
    bytes_act = 2 * tb * max(pdims) * 4
    vmem_limit = int(min(0.9 * _vmem_capacity_bytes(),
                         2 * bytes_params + bytes_io + bytes_act + (16 << 20)))

    flops = 2 * b_pad * sum(pdims[i] * pdims[i + 1] for i in range(num_linear))
    bytes_accessed = (int(x_p.size) * in_itemsize
                      + b_pad * pdims[-1] * out_itemsize + bytes_params)
    cost = pl.CostEstimate(flops=flops, transcendentals=0,
                           bytes_accessed=bytes_accessed)

    def make_in_specs(weight_pipeline_mode):
        specs = [pl.BlockSpec((tb, pdims[0]), lambda i: (i, 0))]
        for li in range(num_linear):
            kw = ({} if weight_pipeline_mode is None
                  else {"pipeline_mode": weight_pipeline_mode})
            # Constant block index -> weights/biases stay VMEM-resident.
            specs.append(pl.BlockSpec(w_ps[li].shape, lambda i: (0, 0), **kw))
            specs.append(pl.BlockSpec(b_ps[li].shape, lambda i: (0, 0), **kw))
        return specs

    def call(in_specs):
        return pl.pallas_call(
            kernel,
            out_shape=out_shape,
            grid=grid,
            in_specs=in_specs,
            out_specs=out_specs,
            compiler_params=pltpu.CompilerParams(
                dimension_semantics=("parallel",),
                vmem_limit_bytes=vmem_limit,
            ),
            cost_estimate=cost,
        )(*args)

    try:
        # Single-buffer the resident weights: halves their VMEM footprint
        # (the difference between fitting and OOM in v7x's 64 MiB).
        out_p = call(make_in_specs(pl.Buffered(1)))
    except Exception:
        # Fallback for builds where pipeline_mode isn't supported here
        # (default double-buffering; identical results).
        out_p = call(make_in_specs(None))

    return out_p[:B, :out_dim].astype(jnp.float32)


def _init_linear(key, in_dim, out_dim):
    """Deterministic init mimicking nn.Linear default (uniform +-1/sqrt(in))."""
    kw, kb = jax.random.split(key)
    bound = 1.0 / (in_dim ** 0.5)
    # Stored as (in_dim, out_dim): transpose of PyTorch's (out_dim, in_dim).
    w = jax.random.uniform(kw, (in_dim, out_dim), jnp.float32, -bound, bound)
    b = jax.random.uniform(kb, (1, out_dim), jnp.float32, -bound, bound)
    return w, b


def build_encoder_fc_params(key, layers):
    """Matches EncoderFC.__init__: inp, hidden square layers, out."""
    dims = [(layers[0], layers[1])]
    for h in layers[1:-1]:
        dims.append((h, h))
    dims.append((layers[-2], layers[-1]))

    weights, biases = [], []
    for i, (din, dout) in enumerate(dims):
        w, b = _init_linear(jax.random.fold_in(key, i), din, dout)
        weights.append(w)
        biases.append(b)
    return weights, biases


def encoder_fc_reference(x, weights, biases):
    """Plain-JAX f32 reference for correctness checking."""
    h = x
    for i, (w, b) in enumerate(zip(weights, biases)):
        h = h @ w + b[0]
        if i != len(weights) - 1:
            h = jnp.maximum(h, 0.0)
    return h


if __name__ == "__main__":
    key = jax.random.PRNGKey(0)

    # layers = [input_dim, hidden, hidden, latent]
    layers = [16, 32, 32, 8]
    batch = 256

    kx, kp = jax.random.split(key)
    x = jax.random.normal(kx, (batch, layers[0]), jnp.float32)
    weights, biases = build_encoder_fc_params(kp, layers)

    # Pad/cast parameters ONCE (hoisted out of the per-call hot path).
    w_ps, b_ps = prepare_encoder_fc_params(weights, biases,
                                           weight_dtype=jnp.bfloat16)

    # Called eagerly so the Buffered(1) -> default-buffering fallback can
    # engage if this JAX build lacks pipeline_mode support; under jax.jit the
    # first (Buffered) path is the one that gets compiled.
    out = encoder_fc_pallas(x, w_ps, b_ps, out_dim=layers[-1])
    out = jax.block_until_ready(out)

    ref = encoder_fc_reference(x, weights, biases)
    assert out.shape == (batch, layers[-1])
    # bf16 MXU inputs with f32 accumulation: loose tolerance vs the f32 ref.
    # (Use weight_dtype=jnp.float32 in prepare_encoder_fc_params for parity.)
    err = float(jnp.max(jnp.abs(out - ref)))
    assert jnp.allclose(out, ref, atol=5e-2, rtol=5e-2), (
        f"mismatch vs reference, max abs err = {err}")

    print("KERNEL_OK")
</pallas_src>

<mosaic_0001>
module attributes {stable_mosaic.version = 11 : i64} {
  func.func @kernel(%arg0: i32, %arg1: memref<256x128xbf16, #tpu.memory_space<vmem>>, %arg2: memref<128x128xbf16, #tpu.memory_space<vmem>>, %arg3: memref<1x128xf32, #tpu.memory_space<vmem>>, %arg4: memref<128x128xbf16, #tpu.memory_space<vmem>>, %arg5: memref<1x128xf32, #tpu.memory_space<vmem>>, %arg6: memref<128x128xbf16, #tpu.memory_space<vmem>>, %arg7: memref<1x128xf32, #tpu.memory_space<vmem>>, %arg8: memref<128x128xbf16, #tpu.memory_space<vmem>>, %arg9: memref<1x128xf32, #tpu.memory_space<vmem>>, %arg10: memref<256x128xf32, #tpu.memory_space<vmem>>) attributes {dimension_semantics = [#tpu.dimension_semantics<parallel>], iteration_bounds = array<i64: 1>, scalar_prefetch = 0 : i64, scratch_operands = 0 : i64, tpu.core_type = #tpu.core_type<tc>, window_params = [{transform_indices = @transform_0, window_bounds = array<i64: 256, 128>}, {pipeline_mode = #tpu.pipeline_mode<synchronous>, transform_indices = @transform_1, window_bounds = array<i64: 128, 128>}, {pipeline_mode = #tpu.pipeline_mode<synchronous>, transform_indices = @transform_2, window_bounds = array<i64: 1, 128>}, {pipeline_mode = #tpu.pipeline_mode<synchronous>, transform_indices = @transform_3, window_bounds = array<i64: 128, 128>}, {pipeline_mode = #tpu.pipeline_mode<synchronous>, transform_indices = @transform_4, window_bounds = array<i64: 1, 128>}, {pipeline_mode = #tpu.pipeline_mode<synchronous>, transform_indices = @transform_5, window_bounds = array<i64: 128, 128>}, {pipeline_mode = #tpu.pipeline_mode<synchronous>, transform_indices = @transform_6, window_bounds = array<i64: 1, 128>}, {pipeline_mode = #tpu.pipeline_mode<synchronous>, transform_indices = @transform_7, window_bounds = array<i64: 128, 128>}, {pipeline_mode = #tpu.pipeline_mode<synchronous>, transform_indices = @transform_8, window_bounds = array<i64: 1, 128>}, {transform_indices = @transform_9, window_bounds = array<i64: 256, 128>}]} {
    %c0 = arith.constant 0 : index
    %c0_0 = arith.constant 0 : index
    %0 = vector.load %arg1[%c0, %c0_0] : memref<256x128xbf16, #tpu.memory_space<vmem>>, vector<256x128xbf16>
    %c0_1 = arith.constant 0 : index
    %c0_2 = arith.constant 0 : index
    %1 = vector.load %arg2[%c0_1, %c0_2] : memref<128x128xbf16, #tpu.memory_space<vmem>>, vector<128x128xbf16>
    %cst = arith.constant dense<0.000000e+00> : vector<256x128xf32>
    %2 = tpu.matmul %0, %1, %cst {dimension_numbers = #tpu.dot_dimension_numbers<[1], [0], [0], [1], [0, 0, 1, 1], [], []>} : vector<256x128xbf16>, vector<128x128xbf16>, vector<256x128xf32> -> vector<256x128xf32>
    %c0_3 = arith.constant 0 : index
    %c0_4 = arith.constant 0 : index
    %3 = vector.load %arg3[%c0_3, %c0_4] : memref<1x128xf32, #tpu.memory_space<vmem>>, vector<1x128xf32>
    %4 = vector.broadcast %3 : vector<1x128xf32> to vector<256x128xf32>
    %5 = arith.addf %2, %4 : vector<256x128xf32>
    %cst_5 = arith.constant 0.000000e+00 : f32
    %6 = vector.broadcast %cst_5 : f32 to vector<256x128xf32>
    %7 = arith.maximumf %5, %6 : vector<256x128xf32>
    %8 = arith.truncf %7 : vector<256x128xf32> to vector<256x128xbf16>
    %c0_6 = arith.constant 0 : index
    %c0_7 = arith.constant 0 : index
    %9 = vector.load %arg4[%c0_6, %c0_7] : memref<128x128xbf16, #tpu.memory_space<vmem>>, vector<128x128xbf16>
    %cst_8 = arith.constant dense<0.000000e+00> : vector<256x128xf32>
    %10 = tpu.matmul %8, %9, %cst_8 {dimension_numbers = #tpu.dot_dimension_numbers<[1], [0], [0], [1], [0, 0, 1, 1], [], []>} : vector<256x128xbf16>, vector<128x128xbf16>, vector<256x128xf32> -> vector<256x128xf32>
    %c0_9 = arith.constant 0 : index
    %c0_10 = arith.constant 0 : index
    %11 = vector.load %arg5[%c0_9, %c0_10] : memref<1x128xf32, #tpu.memory_space<vmem>>, vector<1x128xf32>
    %12 = vector.broadcast %11 : vector<1x128xf32> to vector<256x128xf32>
    %13 = arith.addf %10, %12 : vector<256x128xf32>
    %cst_11 = arith.constant 0.000000e+00 : f32
    %14 = vector.broadcast %cst_11 : f32 to vector<256x128xf32>
    %15 = arith.maximumf %13, %14 : vector<256x128xf32>
    %16 = arith.truncf %15 : vector<256x128xf32> to vector<256x128xbf16>
    %c0_12 = arith.constant 0 : index
    %c0_13 = arith.constant 0 : index
    %17 = vector.load %arg6[%c0_12, %c0_13] : memref<128x128xbf16, #tpu.memory_space<vmem>>, vector<128x128xbf16>
    %cst_14 = arith.constant dense<0.000000e+00> : vector<256x128xf32>
    %18 = tpu.matmul %16, %17, %cst_14 {dimension_numbers = #tpu.dot_dimension_numbers<[1], [0], [0], [1], [0, 0, 1, 1], [], []>} : vector<256x128xbf16>, vector<128x128xbf16>, vector<256x128xf32> -> vector<256x128xf32>
    %c0_15 = arith.constant 0 : index
    %c0_16 = arith.constant 0 : index
    %19 = vector.load %arg7[%c0_15, %c0_16] : memref<1x128xf32, #tpu.memory_space<vmem>>, vector<1x128xf32>
    %20 = vector.broadcast %19 : vector<1x128xf32> to vector<256x128xf32>
    %21 = arith.addf %18, %20 : vector<256x128xf32>
    %cst_17 = arith.constant 0.000000e+00 : f32
    %22 = vector.broadcast %cst_17 : f32 to vector<256x128xf32>
    %23 = arith.maximumf %21, %22 : vector<256x128xf32>
    %24 = arith.truncf %23 : vector<256x128xf32> to vector<256x128xbf16>
    %c0_18 = arith.constant 0 : index
    %c0_19 = arith.constant 0 : index
    %25 = vector.load %arg8[%c0_18, %c0_19] : memref<128x128xbf16, #tpu.memory_space<vmem>>, vector<128x128xbf16>
    %cst_20 = arith.constant dense<0.000000e+00> : vector<256x128xf32>
    %26 = tpu.matmul %24, %25, %cst_20 {dimension_numbers = #tpu.dot_dimension_numbers<[1], [0], [0], [1], [0, 0, 1, 1], [], []>} : vector<256x128xbf16>, vector<128x128xbf16>, vector<256x128xf32> -> vector<256x128xf32>
    %c0_21 = arith.constant 0 : index
    %c0_22 = arith.constant 0 : index
    %27 = vector.load %arg9[%c0_21, %c0_22] : memref<1x128xf32, #tpu.memory_space<vmem>>, vector<1x128xf32>
    %28 = vector.broadcast %27 : vector<1x128xf32> to vector<256x128xf32>
    %29 = arith.addf %26, %28 : vector<256x128xf32>
    %c0_23 = arith.constant 0 : index
    %c0_24 = arith.constant 0 : index
    %30 = vector.load %arg10[%c0_23, %c0_24] : memref<256x128xf32, #tpu.memory_space<vmem>>, vector<256x128xf32>
    tpu.vector_store %arg10[%c0_23, %c0_24], %29 {strides = array<i32>} : memref<256x128xf32, #tpu.memory_space<vmem>>, vector<256x128xf32>,
    return
  }
  func.func @transform_0(%arg0: i32) -> (i32, i32) {
    %c0_i32 = arith.constant 0 : i32
    %c0_i32_0 = arith.constant 0 : i32
    return %arg0, %c0_i32 : i32, i32
  }
  func.func @transform_1(%arg0: i32) -> (i32, i32) {
    %c0_i32 = arith.constant 0 : i32
    %c0_i32_0 = arith.constant 0 : i32
    %c0_i32_1 = arith.constant 0 : i32
    return %c0_i32, %c0_i32_0 : i32, i32
  }
  func.func @transform_2(%arg0: i32) -> (i32, i32) {
    %c0_i32 = arith.constant 0 : i32
    %c0_i32_0 = arith.constant 0 : i32
    %c0_i32_1 = arith.constant 0 : i32
    return %c0_i32, %c0_i32_0 : i32, i32
  }
  func.func @transform_3(%arg0: i32) -> (i32, i32) {
    %c0_i32 = arith.constant 0 : i32
    %c0_i32_0 = arith.constant 0 : i32
    %c0_i32_1 = arith.constant 0 : i32
    return %c0_i32, %c0_i32_0 : i32, i32
  }
  func.func @transform_4(%arg0: i32) -> (i32, i32) {
    %c0_i32 = arith.constant 0 : i32
    %c0_i32_0 = arith.constant 0 : i32
    %c0_i32_1 = arith.constant 0 : i32
    return %c0_i32, %c0_i32_0 : i32, i32
  }
  func.func @transform_5(%arg0: i32) -> (i32, i32) {
    %c0_i32 = arith.constant 0 : i32
    %c0_i32_0 = arith.constant 0 : i32
    %c0_i32_1 = arith.constant 0 : i32
    return %c0_i32, %c0_i32_0 : i32, i32
  }
  func.func @transform_6(%arg0: i32) -> (i32, i32) {
    %c0_i32 = arith.constant 0 : i32
    %c0_i32_0 = arith.constant 0 : i32
    %c0_i32_1 = arith.constant 0 : i32
    return %c0_i32, %c0_i32_0 : i32, i32
  }
  func.func @transform_7(%arg0: i32) -> (i32, i32) {
    %c0_i32 = arith.constant 0 : i32
    %c0_i32_0 = arith.constant 0 : i32
    %c0_i32_1 = arith.constant 0 : i32
    return %c0_i32, %c0_i32_0 : i32, i32
  }
  func.func @transform_8(%arg0: i32) -> (i32, i32) {
    %c0_i32 = arith.constant 0 : i32
    %c0_i32_0 = arith.constant 0 : i32
    %c0_i32_1 = arith.constant 0 : i32
    return %c0_i32, %c0_i32_0 : i32, i32
  }
  func.func @transform_9(%arg0: i32) -> (i32, i32) {
    %c0_i32 = arith.constant 0 : i32
    %c0_i32_0 = arith.constant 0 : i32
    return %arg0, %c0_i32 : i32, i32
  }
}

module attributes {stable_mosaic.version = 11 : i64} {
  func.func @kernel(%arg0: i32, %arg1: memref<256x128xbf16, #tpu.memory_space<vmem>>, %arg2: memref<128x128xbf16, #tpu.memory_space<vmem>>, %arg3: memref<1x128xf32, #tpu.memory_space<vmem>>, %arg4: memref<128x128xbf16, #tpu.memory_space<vmem>>, %arg5: memref<1x128xf32, #tpu.memory_space<vmem>>, %arg6: memref<128x128xbf16, #tpu.memory_space<vmem>>, %arg7: memref<1x128xf32, #tpu.memory_space<vmem>>, %arg8: memref<128x128xbf16, #tpu.memory_space<vmem>>, %arg9: memref<1x128xf32, #tpu.memory_space<vmem>>, %arg10: memref<256x128xf32, #tpu.memory_space<vmem>>) attributes {dimension_semantics = [#tpu.dimension_semantics<parallel>], iteration_bounds = array<i64: 1>, scalar_prefetch = 0 : i64, scratch_operands = 0 : i64, tpu.core_type = #tpu.core_type<tc>, window_params = [{transform_indices = @transform_0, window_bounds = array<i64: 256, 128>}, {pipeline_mode = #tpu.pipeline_mode<synchronous>, transform_indices = @transform_1, window_bounds = array<i64: 128, 128>}, {pipeline_mode = #tpu.pipeline_mode<synchronous>, transform_indices = @transform_2, window_bounds = array<i64: 1, 128>}, {pipeline_mode = #tpu.pipeline_mode<synchronous>, transform_indices = @transform_3, window_bounds = array<i64: 128, 128>}, {pipeline_mode = #tpu.pipeline_mode<synchronous>, transform_indices = @transform_4, window_bounds = array<i64: 1, 128>}, {pipeline_mode = #tpu.pipeline_mode<synchronous>, transform_indices = @transform_5, window_bounds = array<i64: 128, 128>}, {pipeline_mode = #tpu.pipeline_mode<synchronous>, transform_indices = @transform_6, window_bounds = array<i64: 1, 128>}, {pipeline_mode = #tpu.pipeline_mode<synchronous>, transform_indices = @transform_7, window_bounds = array<i64: 128, 128>}, {pipeline_mode = #tpu.pipeline_mode<synchronous>, transform_indices = @transform_8, window_bounds = array<i64: 1, 128>}, {transform_indices = @transform_9, window_bounds = array<i64: 256, 128>}]} {
    %c0 = arith.constant 0 : index
    %c0_0 = arith.constant 0 : index
    %0 = vector.load %arg1[%c0, %c0_0] : memref<256x128xbf16, #tpu.memory_space<vmem>>, vector<256x128xbf16>
    %c0_1 = arith.constant 0 : index
    %c0_2 = arith.constant 0 : index
    %1 = vector.load %arg2[%c0_1, %c0_2] : memref<128x128xbf16, #tpu.memory_space<vmem>>, vector<128x128xbf16>
    %cst = arith.constant dense<0.000000e+00> : vector<256x128xf32>
    %2 = tpu.matmul %0, %1, %cst {dimension_numbers = #tpu.dot_dimension_numbers<[1], [0], [0], [1], [0, 0, 1, 1], [], []>} : vector<256x128xbf16>, vector<128x128xbf16>, vector<256x128xf32> -> vector<256x128xf32>
    %c0_3 = arith.constant 0 : index
    %c0_4 = arith.constant 0 : index
    %3 = vector.load %arg3[%c0_3, %c0_4] : memref<1x128xf32, #tpu.memory_space<vmem>>, vector<1x128xf32>
    %4 = vector.broadcast %3 : vector<1x128xf32> to vector<256x128xf32>
    %5 = arith.addf %2, %4 : vector<256x128xf32>
    %cst_5 = arith.constant 0.000000e+00 : f32
    %6 = vector.broadcast %cst_5 : f32 to vector<256x128xf32>
    %7 = arith.maximumf %5, %6 : vector<256x128xf32>
    %8 = arith.truncf %7 : vector<256x128xf32> to vector<256x128xbf16>
    %c0_6 = arith.constant 0 : index
    %c0_7 = arith.constant 0 : index
    %9 = vector.load %arg4[%c0_6, %c0_7] : memref<128x128xbf16, #tpu.memory_space<vmem>>, vector<128x128xbf16>
    %cst_8 = arith.constant dense<0.000000e+00> : vector<256x128xf32>
    %10 = tpu.matmul %8, %9, %cst_8 {dimension_numbers = #tpu.dot_dimension_numbers<[1], [0], [0], [1], [0, 0, 1, 1], [], []>} : vector<256x128xbf16>, vector<128x128xbf16>, vector<256x128xf32> -> vector<256x128xf32>
    %c0_9 = arith.constant 0 : index
    %c0_10 = arith.constant 0 : index
    %11 = vector.load %arg5[%c0_9, %c0_10] : memref<1x128xf32, #tpu.memory_space<vmem>>, vector<1x128xf32>
    %12 = vector.broadcast %11 : vector<1x128xf32> to vector<256x128xf32>
    %13 = arith.addf %10, %12 : vector<256x128xf32>
    %cst_11 = arith.constant 0.000000e+00 : f32
    %14 = vector.broadcast %cst_11 : f32 to vector<256x128xf32>
    %15 = arith.maximumf %13, %14 : vector<256x128xf32>
    %16 = arith.truncf %15 : vector<256x128xf32> to vector<256x128xbf16>
    %c0_12 = arith.constant 0 : index
    %c0_13 = arith.constant 0 : index
    %17 = vector.load %arg6[%c0_12, %c0_13] : memref<128x128xbf16, #tpu.memory_space<vmem>>, vector<128x128xbf16>
    %cst_14 = arith.constant dense<0.000000e+00> : vector<256x128xf32>
    %18 = tpu.matmul %16, %17, %cst_14 {dimension_numbers = #tpu.dot_dimension_numbers<[1], [0], [0], [1], [0, 0, 1, 1], [], []>} : vector<256x128xbf16>, vector<128x128xbf16>, vector<256x128xf32> -> vector<256x128xf32>
    %c0_15 = arith.constant 0 : index
    %c0_16 = arith.constant 0 : index
    %19 = vector.load %arg7[%c0_15, %c0_16] : memref<1x128xf32, #tpu.memory_space<vmem>>, vector<1x128xf32>
    %20 = vector.broadcast %19 : vector<1x128xf32> to vector<256x128xf32>
    %21 = arith.addf %18, %20 : vector<256x128xf32>
    %cst_17 = arith.constant 0.000000e+00 : f32
    %22 = vector.broadcast %cst_17 : f32 to vector<256x128xf32>
    %23 = arith.maximumf %21, %22 : vector<256x128xf32>
    %24 = arith.truncf %23 : vector<256x128xf32> to vector<256x128xbf16>
    %c0_18 = arith.constant 0 : index
    %c0_19 = arith.constant 0 : index
    %25 = vector.load %arg8[%c0_18, %c0_19] : memref<128x128xbf16, #tpu.memory_space<vmem>>, vector<128x128xbf16>
    %cst_20 = arith.constant dense<0.000000e+00> : vector<256x128xf32>
    %26 = tpu.matmul %24, %25, %cst_20 {dimension_numbers = #tpu.dot_dimension_numbers<[1], [0], [0], [1], [0, 0, 1, 1], [], []>} : vector<256x128xbf16>, vector<128x128xbf16>, vector<256x128xf32> -> vector<256x128xf32>
    %c0_21 = arith.constant 0 : index
    %c0_22 = arith.constant 0 : index
    %27 = vector.load %arg9[%c0_21, %c0_22] : memref<1x128xf32, #tpu.memory_space<vmem>>, vector<1x128xf32>
    %28 = vector.broadcast %27 : vector<1x128xf32> to vector<256x128xf32>
    %29 = arith.addf %26, %28 : vector<256x128xf32>
    %c0_23 = arith.constant 0 : index
    %c0_24 = arith.constant 0 : index
    %30 = vector.load %arg10[%c0_23, %c0_24] : memref<256x128xf32, #tpu.memory_space<vmem>>, vector<256x128xf32>
    tpu.vector_store %arg10[%c0_23, %c0_24], %29 {strides = array<i32>} : memref<256x128xf32, #tpu.memory_space<vmem>>, vector<256x128xf32>,
    return
  }
  func.func @transform_0(%arg0: i32) -> (i32, i32) {
    %c0_i32 = arith.constant 0 : i32
    %c0_i32_0 = arith.constant 0 : i32
    return %arg0, %c0_i32 : i32, i32
  }
  func.func @transform_1(%arg0: i32) -> (i32, i32) {
    %c0_i32 = arith.constant 0 : i32
    %c0_i32_0 = arith.constant 0 : i32
    %c0_i32_1 = arith.constant 0 : i32
    return %c0_i32, %c0_i32_0 : i32, i32
  }
  func.func @transform_2(%arg0: i32) -> (i32, i32) {
    %c0_i32 = arith.constant 0 : i32
    %c0_i32_0 = arith.constant 0 : i32
    %c0_i32_1 = arith.constant 0 : i32
    return %c0_i32, %c0_i32_0 : i32, i32
  }
  func.func @transform_3(%arg0: i32) -> (i32, i32) {
    %c0_i32 = arith.constant 0 : i32
    %c0_i32_0 = arith.constant 0 : i32
    %c0_i32_1 = arith.constant 0 : i32
    return %c0_i32, %c0_i32_0 : i32, i32
  }
  func.func @transform_4(%arg0: i32) -> (i32, i32) {
    %c0_i32 = arith.constant 0 : i32
    %c0_i32_0 = arith.constant 0 : i32
    %c0_i32_1 = arith.constant 0 : i32
    return %c0_i32, %c0_i32_0 : i32, i32
  }
  func.func @transform_5(%arg0: i32) -> (i32, i32) {
    %c0_i32 = arith.constant 0 : i32
    %c0_i32_0 = arith.constant 0 : i32
    %c0_i32_1 = arith.constant 0 : i32
    return %c0_i32, %c0_i32_0 : i32, i32
  }
  func.func @transform_6(%arg0: i32) -> (i32, i32) {
    %c0_i32 = arith.constant 0 : i32
    %c0_i32_0 = arith.constant 0 : i32
    %c0_i32_1 = arith.constant 0 : i32
    return %c0_i32, %c0_i32_0 : i32, i32
  }
  func.func @transform_7(%arg0: i32) -> (i32, i32) {
    %c0_i32 = arith.constant 0 : i32
    %c0_i32_0 = arith.constant 0 : i32
    %c0_i32_1 = arith.constant 0 : i32
    return %c0_i32, %c0_i32_0 : i32, i32
  }
  func.func @transform_8(%arg0: i32) -> (i32, i32) {
    %c0_i32 = arith.constant 0 : i32
    %c0_i32_0 = arith.constant 0 : i32
    %c0_i32_1 = arith.constant 0 : i32
    return %c0_i32, %c0_i32_0 : i32, i32
  }
  func.func @transform_9(%arg0: i32) -> (i32, i32) {
    %c0_i32 = arith.constant 0 : i32
    %c0_i32_0 = arith.constant 0 : i32
    return %arg0, %c0_i32 : i32, i32
  }
}

</mosaic_0001>

<bundles_post_ra>
// kernel: tpu_custom_call.1
= control target key start
LH: loop header
LB: loop body
LE: loop exit
PB: predicated region body
PF: predicated region fallthrough
CT: control target
= control target key end

     0   :  { %14 = vsyncpa [#allocation3], 0  ;;  %s2120_s0 = inlined_call_operand.hbm [shape: bf16[256,128], index: 0, kind: input, shape index: {}]   ;;  %s2121_s1 = inlined_call_operand.hbm [shape: bf16[128,128], index: 1, kind: input, shape index: {}]   ;;  %s2122_s2 = inlined_call_operand.vmem [shape: f32[1,128], index: 2, kind: input, shape index: {}]   ;;  %s2123_s3 = inlined_call_operand.hbm [shape: bf16[128,128], index: 3, kind: input, shape index: {}]   ;;  %s2124_s4 = inlined_call_operand.vmem [shape: f32[1,128], index: 4, kind: input, shape index: {}]   ;;  %s2125_s5 = inlined_call_operand.hbm [shape: bf16[128,128], index: 5, kind: input, shape index: {}]   ;;  %s2126_s6 = inlined_call_operand.vmem [shape: f32[1,128], index: 6, kind: input, shape index: {}]   ;;  %s2127_s7 = inlined_call_operand.hbm [shape: bf16[128,128], index: 7, kind: input, shape index: {}]   ;;  %s2128_s8 = inlined_call_operand.vmem [shape: f32[1,128], index: 8, kind: input, shape index: {}]   ;;  %s2129_s9 = inlined_call_operand.hbm [shape: f32[256,128], index: 9, kind: output, shape index: {}]  }
   0x1   :  { %15 = vsyncpa [#allocation6], 0 }
   0x2   :  { %16 = vsyncpa [#allocation9], 0 }
   0x3   :  { %17 = vsyncpa [#allocation4], 0  ;;  %s1879_s30 = smov [#allocation5]   ;;  %s1880_s11 = smov [#allocation8]  }
   0x4   :  { %s35_s10 = sshll.u32 %s1879_s30, 4  ;;  %s63_s12 = sshll.u32 %s1880_s11, 4  ;;  %s36_s10 = int_to_ptr.vmem [resolvable:$true] %s35_s10  ;;  %s64_s12 = int_to_ptr.vmem [resolvable:$true] %s63_s12 }
   0x5   :  { %s1759_s13 = scalar_lea.vmem %s36_s10, 1024  ;;  %p1764_p1 = scmp.lt.s32.totalorder %s36_s10, %s36_s10 }
   0x6   :  { %p1760_p0 = scmp.ne.s32.totalorder %s36_s10, %s1759_s13  ;;  %p1765_p2 = scmp.lt.s32.totalorder %s1759_s13, %s1759_s13 }
   0x8   :  { %p1766_p3 = por %p1765_p2, %p1764_p1 }
   0xa   :  { %p1767_p4 = pnand %p1766_p3, %p1760_p0 }
   0xc   :  { %1770 = shalt.err (!%p1767_p4)
}
   0xd   :  { %s1881_s14 = smov 64   ;;  %s1882_s15 = smov 4  }
   0xe   :  { %41 = dma.hbm_to_vmem [thread:$0]  %s2121_s1, 1024, %s36_s10, [#allocation6], %s1881_s14, %s1881_s14, %s1882_s15  }
   0xf   :  { %s1779_s18 = scalar_lea.vmem %s64_s12, 1024  ;;  %p1784_p6 = scmp.lt.s32.totalorder %s64_s12, %s64_s12 }
  0x10   :  { %p1780_p5 = scmp.ne.s32.totalorder %s64_s12, %s1779_s18  ;;  %p1785_p7 = scmp.lt.s32.totalorder %s1779_s18, %s1779_s18 }
  0x12   :  { %p1786_p8 = por %p1785_p7, %p1784_p6 }
  0x14   :  { %p1787_p9 = pnand %p1786_p8, %p1780_p5 }
  0x16   :  { %1790 = shalt.err (!%p1787_p9)
}
  0x17   :  { %69 = dma.hbm_to_vmem [thread:$0]  %s2125_s5, 1024, %s64_s12, [#allocation9], %s1881_s14, %s1881_s14, %s1882_s15  }
  0x18   :  { %s1883_s21 = smov [#allocation2]   ;;  %s1884_s23 = smov [#allocation7]  }
  0x19   :  { %s23_s22 = sshll.u32 %s1883_s21, 4  ;;  %s49_s24 = sshll.u32 %s1884_s23, 4  ;;  %s24_s22 = int_to_ptr.vmem [resolvable:$true] %s23_s22  ;;  %s50_s24 = int_to_ptr.vmem [resolvable:$true] %s49_s24 }
  0x1a   :  { %s1799_s1 = scalar_lea.vmem %s24_s22, 2048  ;;  %p1804_p11 = scmp.lt.s32.totalorder %s24_s22, %s24_s22 }
  0x1b   :  { %p1800_p10 = scmp.ne.s32.totalorder %s24_s22, %s1799_s1  ;;  %p1805_p12 = scmp.lt.s32.totalorder %s1799_s1, %s1799_s1 }
  0x1d   :  { %p1806_p13 = por %p1805_p12, %p1804_p11 }
  0x1f   :  { %p1807_p0 = pnand %p1806_p13, %p1800_p10 }
  0x21   :  { %1810 = shalt.err (!%p1807_p0)
}
  0x22   :  { %29 = dma.hbm_to_vmem [thread:$0]  %s2120_s0, 2048, %s24_s22, [#allocation3], %s1881_s14, %s1881_s14, %s1882_s15  }
  0x23   :  { %s1819_s5 = scalar_lea.vmem %s50_s24, 1024  ;;  %p1824_p2 = scmp.lt.s32.totalorder %s50_s24, %s50_s24 }
  0x24   :  { %p1820_p1 = scmp.ne.s32.totalorder %s50_s24, %s1819_s5  ;;  %p1825_p3 = scmp.lt.s32.totalorder %s1819_s5, %s1819_s5 }
  0x26   :  { %p1826_p4 = por %p1825_p3, %p1824_p2 }
  0x28   :  { %p1827_p5 = pnand %p1826_p4, %p1820_p1 }
  0x2a   :  { %1830 = shalt.err (!%p1827_p5)
}
  0x2b   :  { %55 = dma.hbm_to_vmem [thread:$0]  %s2123_s3, 1024, %s50_s24, [#allocation6], %s1881_s14, %s1881_s14, %s1882_s15  }
  0x2c   :  { %s1885_s29 = smov [#allocation10]  }
  0x2d   :  { %s77_s30 = sshll.u32 %s1885_s29, 4  ;;  %s78_s30 = int_to_ptr.vmem [resolvable:$true] %s77_s30 }
  0x2e   :  { %s1839_s10 = scalar_lea.vmem %s78_s30, 1024  ;;  %p1844_p7 = scmp.lt.s32.totalorder %s78_s30, %s78_s30 }
  0x2f   :  { %p1840_p6 = scmp.ne.s32.totalorder %s78_s30, %s1839_s10  ;;  %p1845_p8 = scmp.lt.s32.totalorder %s1839_s10, %s1839_s10 }
  0x31   :  { %p1846_p9 = por %p1845_p8, %p1844_p7 }
  0x33   :  { %p1847_p10 = pnand %p1846_p9, %p1840_p6 }
  0x35   :  { %1850 = shalt.err (!%p1847_p10)
}
  0x36   :  { %83 = dma.hbm_to_vmem [thread:$0]  %s2127_s7, 1024, %s78_s30, [#allocation9], %s1881_s14, %s1881_s14, %s1882_s15  }
  0x37   :  { %1871 = dma.done.wait [#allocation3], 2048  }
  0x38   :  { %1872 = vsyncadd [#allocation3], 4294965248 }
  0x39   :  { %1873 = dma.done.wait [#allocation6], 2048  }
  0x3a   :  { %1874 = vsyncadd [#allocation6], 4294965248 }
  0x3b   :  { %1875 = dma.done.wait [#allocation9], 2048  }
  0x3c   :  { %1876 = vsyncadd [#allocation9], 4294965248  ;;  %v1703_v0 = vld [vmem:[#allocation5 + $0x38] sm:$0xff]   ;;  %v1704_v1 = vld [vmem:[#allocation5 + $0x30] sm:$0xff]  }
  0x3d   :  { %1501 = vmatprep.subr.bf16.mxu0 %v1703_v0  ;;  %v1705_v2 = vld [vmem:[#allocation5 + $0x28] sm:$0xff]   ;;  %v1706_v3 = vld [vmem:[#allocation5 + $0x20] sm:$0xff]   ;;  %v1707_v5 = vld [vmem:[#allocation5 + $0x18] sm:$0xff]  }
  0x3e   :  { %1502 = vmatpush3.bf16.msra.mxu0 %v1703_v0  ;;  %v1711_v4 = vld [vmem:[#allocation2] sm:$0xff]   ;;  %v1708_v6 = vld [vmem:[#allocation5 + $0x10] sm:$0xff]   ;;  %v1709_v7 = vld [vmem:[#allocation5 + $0x8] sm:$0xff]  }
  0x3f   :  { %1503 = vmatprep.subr.bf16.mxu0 %v1704_v1  ;;  %1517 = vmatprep.mubr.bf16.mxu0 %v1711_v4  ;;  %v1710_v8 = vld [vmem:[#allocation5] sm:$0xff]   ;;  %v1727_v9 = vld [vmem:[#allocation7 + $0x38] sm:$0xff]   ;;  %v1728_v10 = vld [vmem:[#allocation7 + $0x30] sm:$0xff]  }
  0x40   :  { %1549 = vmatprep.subr.bf16.mxu1 %v1727_v9  ;;  %v1712_v11 = vld [vmem:[#allocation2 + $0x8] sm:$0xff]   ;;  %v1713_v13 = vld [vmem:[#allocation2 + $0x10] sm:$0xff]   ;;  %v1730_v14 = vld [vmem:[#allocation7 + $0x20] sm:$0xff]  }
  0x41   :  { %1550 = vmatpush3.bf16.msra.mxu1 %v1727_v9  ;;  %v1729_v12 = vld [vmem:[#allocation7 + $0x28] sm:$0xff]   ;;  %v1731_v15 = vld [vmem:[#allocation7 + $0x18] sm:$0xff]   ;;  %v1715_v17 = vld [vmem:[#allocation2 + $0x20] sm:$0xff]  }
  0x42   :  { %1504 = vmatpush3.bf16.msra.mxu0 %v1704_v1  ;;  %1551 = vmatprep.subr.bf16.mxu1 %v1728_v10  ;;  %v1714_v16 = vld [vmem:[#allocation2 + $0x18] sm:$0xff]   ;;  %v1716_v18 = vld [vmem:[#allocation2 + $0x28] sm:$0xff]   ;;  %v1717_v19 = vld [vmem:[#allocation2 + $0x30] sm:$0xff]  }
  0x43   :  { %1505 = vmatprep.subr.bf16.mxu0 %v1705_v2  ;;  %v1718_v20 = vld [vmem:[#allocation2 + $0x38] sm:$0xff]   ;;  %v1719_v21 = vld [vmem:[#allocation2 + $0x40] sm:$0xff]   ;;  %v1720_v22 = vld [vmem:[#allocation2 + $0x48] sm:$0xff]  }
  0x44   :  { %v1721_v23 = vld [vmem:[#allocation2 + $0x50] sm:$0xff]   ;;  %v1722_v24 = vld [vmem:[#allocation2 + $0x58] sm:$0xff]   ;;  %v1723_v25 = vld [vmem:[#allocation2 + $0x60] sm:$0xff]  }
  0x45   :  { %1552 = vmatpush3.bf16.msra.mxu1 %v1728_v10  ;;  %v1724_v26 = vld [vmem:[#allocation2 + $0x68] sm:$0xff]   ;;  %v1725_v27 = vld [vmem:[#allocation2 + $0x70] sm:$0xff]   ;;  %v1726_v28 = vld [vmem:[#allocation2 + $0x78] sm:$0xff]  }
  0x46   :  { %1506 = vmatpush3.bf16.msra.mxu0 %v1705_v2  ;;  %1553 = vmatprep.subr.bf16.mxu1 %v1729_v12  ;;  %v1732_v29 = vld [vmem:[#allocation7 + $0x10] sm:$0xff]   ;;  %v1733_v30 = vld [vmem:[#allocation7 + $0x8] sm:$0xff]   ;;  %v1734_v31 = vld [vmem:[#allocation7] sm:$0xff]  }
  0x47   :  { %1507 = vmatprep.subr.bf16.mxu0 %v1706_v3  ;;  %v1735_v32 = vld [vmem:[#allocation8 + $0x38] sm:$0xff]   ;;  %v1736_v33 = vld [vmem:[#allocation8 + $0x30] sm:$0xff]   ;;  %v1737_v34 = vld [vmem:[#allocation8 + $0x28] sm:$0xff]  }
  0x48   :  { %v1738_v35 = vld [vmem:[#allocation8 + $0x20] sm:$0xff]   ;;  %v1739_v36 = vld [vmem:[#allocation8 + $0x18] sm:$0xff]   ;;  %v1740_v37 = vld [vmem:[#allocation8 + $0x10] sm:$0xff]  }
  0x49   :  { %1554 = vmatpush3.bf16.msra.mxu1 %v1729_v12  ;;  %v1741_v38 = vld [vmem:[#allocation8 + $0x8] sm:$0xff]   ;;  %v1972_v41 = vld [vmem:[%s2122_s2] ss:$0 sm:$0xff] }
  0x4a   :  { %1508 = vmatpush3.bf16.msra.mxu0 %v1706_v3  ;;  %1555 = vmatprep.subr.bf16.mxu1 %v1730_v14 }
  0x4b   :  { %1509 = vmatprep.subr.bf16.mxu0 %v1707_v5 }
  0x4d   :  { %1556 = vmatpush3.bf16.msra.mxu1 %v1730_v14 }
  0x4e   :  { %1510 = vmatpush3.bf16.msra.mxu0 %v1707_v5  ;;  %1557 = vmatprep.subr.bf16.mxu1 %v1731_v15 }
  0x4f   :  { %1511 = vmatprep.subr.bf16.mxu0 %v1708_v6 }
  0x51   :  { %1558 = vmatpush3.bf16.msra.mxu1 %v1731_v15 }
  0x52   :  { %1512 = vmatpush3.bf16.msra.mxu0 %v1708_v6  ;;  %1559 = vmatprep.subr.bf16.mxu1 %v1732_v29 }
  0x53   :  { %1513 = vmatprep.subr.bf16.mxu0 %v1709_v7 }
  0x55   :  { %1560 = vmatpush3.bf16.msra.mxu1 %v1732_v29 }
  0x56   :  { %1514 = vmatpush3.bf16.msra.mxu0 %v1709_v7  ;;  %1561 = vmatprep.subr.bf16.mxu1 %v1733_v30 }
  0x57   :  { %1515 = vmatprep.subr.bf16.mxu0 %v1710_v8 }
  0x59   :  { %1562 = vmatpush3.bf16.msra.mxu1 %v1733_v30 }
  0x5a   :  { %1516 = vmatpush3.bf16.msra.mxu0 %v1710_v8  ;;  %1563 = vmatprep.subr.bf16.mxu1 %v1734_v31 }
  0x5b   :  { %1597 = vmatprep.subr.bf16.mxu0 %v1735_v32 }
  0x5d   :  { %1518 = vmatmul.mubr.bf16.vlgmr.msra.gmra.mxu0 %v1712_v11  ;;  %1564 = vmatpush3.bf16.msra.mxu1 %v1734_v31 }
  0x5e   :  { %1521 = vmatprep.mubr.bf16.mxu0 %v1713_v13  ;;  %1598 = vmatpush3.bf16.msra.mxu0 %v1735_v32 }
  0x5f   :  { %1599 = vmatprep.subr.bf16.mxu0 %v1736_v33 }
  0x62   :  { %1600 = vmatpush3.bf16.msra.mxu0 %v1736_v33 }
  0x63   :  { %1601 = vmatprep.subr.bf16.mxu0 %v1737_v34 }
  0x65   :  { %1522 = vmatmul.mubr.bf16.gmra.mxu0 %v1714_v16 }
  0x66   :  { %1525 = vmatprep.mubr.bf16.mxu0 %v1715_v17  ;;  %1602 = vmatpush3.bf16.msra.mxu0 %v1737_v34 }
  0x67   :  { %1603 = vmatprep.subr.bf16.mxu0 %v1738_v35 }
  0x6a   :  { %1604 = vmatpush3.bf16.msra.mxu0 %v1738_v35 }
  0x6b   :  { %1605 = vmatprep.subr.bf16.mxu0 %v1739_v36 }
  0x6d   :  { %1526 = vmatmul.mubr.bf16.gmra.mxu0 %v1716_v18 }
  0x6e   :  { %1529 = vmatprep.mubr.bf16.mxu0 %v1717_v19  ;;  %1606 = vmatpush3.bf16.msra.mxu0 %v1739_v36 }
  0x6f   :  { %1607 = vmatprep.subr.bf16.mxu0 %v1740_v37 }
  0x72   :  { %1608 = vmatpush3.bf16.msra.mxu0 %v1740_v37 }
  0x73   :  { %1609 = vmatprep.subr.bf16.mxu0 %v1741_v38 }
  0x75   :  { %1530 = vmatmul.mubr.bf16.gmra.mxu0 %v1718_v20 }
  0x76   :  { %1533 = vmatprep.mubr.bf16.mxu0 %v1719_v21  ;;  %1610 = vmatpush3.bf16.msra.mxu0 %v1741_v38 }
  0x7d   :  { %1534 = vmatmul.mubr.bf16.gmra.mxu0 %v1720_v22 }
  0x7e   :  { %1537 = vmatprep.mubr.bf16.mxu0 %v1721_v23 }
  0x85   :  { %1538 = vmatmul.mubr.bf16.gmra.mxu0 %v1722_v24 }
  0x86   :  { %1541 = vmatprep.mubr.bf16.mxu0 %v1723_v25 }
  0x8d   :  { %1542 = vmatmul.mubr.bf16.gmra.mxu0 %v1724_v26 }
  0x8e   :  { %1545 = vmatprep.mubr.bf16.mxu0 %v1725_v27 }
  0x95   :  { %1546 = vmatmul.mubr.bf16.gmra.mxu0 %v1726_v28 }
 0x11d   :  { %v1519_v39 = vpop.f32.mrf.mxu0 }
 0x11e   :  { %v344_v45 = vadd.f32 %v1519_v39, %v1972_v41 }
 0x11f   :  { %v335_v40 = vpop.f32.mrf.mxu0 }
 0x120   :  { %v336_v43 = vadd.f32 %v1972_v41, %v335_v40  ;;  %v464_v52 = vmax.f32 %v344_v45, 0.0 }
 0x121   :  { %v1520_v42 = vpop.f32.mrf.mxu0 }
 0x122   :  { %v347_v44 = vadd.f32 %v1520_v42, %v1972_v41  ;;  %v462_v50 = vmax.f32 %v336_v43, 0.0 }
 0x123   :  { %v338_v46 = vpop.f32.mrf.mxu0 }
 0x124   :  { %v339_v47 = vadd.f32 %v1972_v41, %v338_v46  ;;  %v465_v48 = vmax.f32 %v347_v44, 0.0 }
 0x125   :  { %v1523_v49 = vpop.f32.mrf.mxu0 }
 0x126   :  { %v463_v51 = vmax.f32 %v339_v47, 0.0  ;;  %v495_v55 = vpack.c.bf16 %v465_v48, %v464_v52  ;;  %v360_v59 = vadd.f32 %v1523_v49, %v1972_v41 }
 0x127   :  { %v351_v53 = vpop.f32.mrf.mxu0 }
 0x128   :  { %v494_v54 = vpack.c.bf16 %v463_v51, %v462_v50  ;;  %v352_v57 = vadd.f32 %v1972_v41, %v351_v53  ;;  %v468_v2 = vmax.f32 %v360_v59, 0.0 }
 0x129   :  { %v1524_v56 = vpop.f32.mrf.mxu0 }
 0x12a   :  { %v363_v58 = vadd.f32 %v1524_v56, %v1972_v41  ;;  %1565 = vmatprep.mubr.bf16.mxu1 %v494_v54  ;;  %v466_v0 = vmax.f32 %v352_v57, 0.0 }
 0x12b   :  { %v354_v60 = vpop.f32.mrf.mxu0  ;;  %1566 = vmatmul.mubr.bf16.vlgmr.msra.gmra.mxu1 %v495_v55 }
 0x12c   :  { %v355_v61 = vadd.f32 %v1972_v41, %v354_v60  ;;  %v469_v62 = vmax.f32 %v363_v58, 0.0 }
 0x12d   :  { %v1527_v63 = vpop.f32.mrf.mxu0 }
 0x12e   :  { %v467_v1 = vmax.f32 %v355_v61, 0.0  ;;  %v497_v5 = vpack.c.bf16 %v469_v62, %v468_v2  ;;  %v376_v9 = vadd.f32 %v1527_v63, %v1972_v41 }
 0x12f   :  { %v367_v3 = vpop.f32.mrf.mxu0 }
 0x130   :  { %v496_v4 = vpack.c.bf16 %v467_v1, %v466_v0  ;;  %v368_v7 = vadd.f32 %v1972_v41, %v367_v3  ;;  %v472_v16 = vmax.f32 %v376_v9, 0.0 }
 0x131   :  { %v1528_v6 = vpop.f32.mrf.mxu0 }
 0x132   :  { %v379_v8 = vadd.f32 %v1528_v6, %v1972_v41  ;;  %1569 = vmatprep.mubr.bf16.mxu1 %v496_v4  ;;  %v470_v14 = vmax.f32 %v368_v7, 0.0 }
 0x133   :  { %v370_v10 = vpop.f32.mrf.mxu0  ;;  %1570 = vmatmul.mubr.bf16.gmra.mxu1 %v497_v5 }
 0x134   :  { %v371_v11 = vadd.f32 %v1972_v41, %v370_v10  ;;  %v473_v12 = vmax.f32 %v379_v8, 0.0 }
 0x135   :  { %v1531_v13 = vpop.f32.mrf.mxu0 }
 0x136   :  { %v471_v15 = vmax.f32 %v371_v11, 0.0  ;;  %v499_v19 = vpack.c.bf16 %v473_v12, %v472_v16  ;;  %v392_v23 = vadd.f32 %v1531_v13, %v1972_v41 }
 0x137   :  { %v383_v17 = vpop.f32.mrf.mxu0 }
 0x138   :  { %v498_v18 = vpack.c.bf16 %v471_v15, %v470_v14  ;;  %v384_v21 = vadd.f32 %v1972_v41, %v383_v17  ;;  %v476_v30 = vmax.f32 %v392_v23, 0.0 }
 0x139   :  { %v1532_v20 = vpop.f32.mrf.mxu0 }
 0x13a   :  { %v395_v22 = vadd.f32 %v1532_v20, %v1972_v41  ;;  %1573 = vmatprep.mubr.bf16.mxu1 %v498_v18  ;;  %v474_v28 = vmax.f32 %v384_v21, 0.0 }
 0x13b   :  { %v386_v24 = vpop.f32.mrf.mxu0  ;;  %1574 = vmatmul.mubr.bf16.gmra.mxu1 %v499_v19 }
 0x13c   :  { %v387_v25 = vadd.f32 %v1972_v41, %v386_v24  ;;  %v477_v26 = vmax.f32 %v395_v22, 0.0 }
 0x13d   :  { %v1535_v27 = vpop.f32.mrf.mxu0 }
 0x13e   :  { %v475_v29 = vmax.f32 %v387_v25, 0.0  ;;  %v501_v33 = vpack.c.bf16 %v477_v26, %v476_v30  ;;  %v408_v37 = vadd.f32 %v1535_v27, %v1972_v41  ;;  %v1742_v25 = vld [vmem:[#allocation8] sm:$0xff]   ;;  %v1743_v26 = vld [vmem:[#allocation10 + $0x38] sm:$0xff]   ;;  %v1744_v27 = vld [vmem:[#allocation10 + $0x30] sm:$0xff]  }
 0x13f   :  { %v399_v31 = vpop.f32.mrf.mxu0  ;;  %1611 = vmatprep.subr.bf16.mxu0 %v1742_v25  ;;  %1645 = vmatprep.subr.bf16.mxu1 %v1743_v26  ;;  %v1748_v30 = vld [vmem:[#allocation10 + $0x10] sm:$0xff]  }
 0x140   :  { %v500_v32 = vpack.c.bf16 %v475_v29, %v474_v28  ;;  %v400_v35 = vadd.f32 %v1972_v41, %v399_v31  ;;  %v480_v45 = vmax.f32 %v408_v37, 0.0  ;;  %1612 = vmatpush3.bf16.msra.mxu0 %v1742_v25  ;;  %1646 = vmatpush3.bf16.msra.mxu1 %v1743_v26  ;;  %v1745_v28 = vld [vmem:[#allocation10 + $0x28] sm:$0xff]   ;;  %v1747_v29 = vld [vmem:[#allocation10 + $0x18] sm:$0xff]  }
 0x141   :  { %v1536_v34 = vpop.f32.mrf.mxu0  ;;  %1647 = vmatprep.subr.bf16.mxu1 %v1744_v27  ;;  %v1749_v31 = vld [vmem:[#allocation10 + $0x8] sm:$0xff]  }
 0x142   :  { %v411_v36 = vadd.f32 %v1536_v34, %v1972_v41  ;;  %1577 = vmatprep.mubr.bf16.mxu1 %v500_v32  ;;  %v478_v43 = vmax.f32 %v400_v35, 0.0  ;;  %v2009_v34 = vld [vmem:[%s2124_s4] ss:$0 sm:$0xff] }
 0x143   :  { %v402_v38 = vpop.f32.mrf.mxu0  ;;  %1578 = vmatmul.mubr.bf16.gmra.mxu1 %v501_v33 }
 0x144   :  { %v403_v39 = vadd.f32 %v1972_v41, %v402_v38  ;;  %v481_v40 = vmax.f32 %v411_v36, 0.0  ;;  %1648 = vmatpush3.bf16.msra.mxu1 %v1744_v27 }
 0x145   :  { %v1539_v42 = vpop.f32.mrf.mxu0  ;;  %1649 = vmatprep.subr.bf16.mxu1 %v1745_v28 }
 0x146   :  { %v479_v44 = vmax.f32 %v403_v39, 0.0  ;;  %v503_v48 = vpack.c.bf16 %v481_v40, %v480_v45  ;;  %v424_v52 = vadd.f32 %v1539_v42, %v1972_v41 }
 0x147   :  { %v415_v46 = vpop.f32.mrf.mxu0 }
 0x148   :  { %v502_v47 = vpack.c.bf16 %v479_v44, %v478_v43  ;;  %v416_v50 = vadd.f32 %v1972_v41, %v415_v46  ;;  %v484_v59 = vmax.f32 %v424_v52, 0.0  ;;  %1650 = vmatpush3.bf16.msra.mxu1 %v1745_v28 }
 0x149   :  { %v1540_v49 = vpop.f32.mrf.mxu0 }
 0x14a   :  { %v427_v51 = vadd.f32 %v1540_v49, %v1972_v41  ;;  %1581 = vmatprep.mubr.bf16.mxu1 %v502_v47  ;;  %v482_v57 = vmax.f32 %v416_v50, 0.0 }
 0x14b   :  { %v418_v53 = vpop.f32.mrf.mxu0  ;;  %1582 = vmatmul.mubr.bf16.gmra.mxu1 %v503_v48 }
 0x14c   :  { %v419_v54 = vadd.f32 %v1972_v41, %v418_v53  ;;  %v485_v55 = vmax.f32 %v427_v51, 0.0 }
 0x14d   :  { %v1543_v56 = vpop.f32.mrf.mxu0 }
 0x14e   :  { %v483_v58 = vmax.f32 %v419_v54, 0.0  ;;  %v505_v62 = vpack.c.bf16 %v485_v55, %v484_v59  ;;  %v440_v2 = vadd.f32 %v1543_v56, %v1972_v41 }
 0x14f   :  { %v431_v60 = vpop.f32.mrf.mxu0 }
 0x150   :  { %v504_v61 = vpack.c.bf16 %v483_v58, %v482_v57  ;;  %v432_v0 = vadd.f32 %v1972_v41, %v431_v60  ;;  %v488_v9 = vmax.f32 %v440_v2, 0.0 }
 0x151   :  { %v1544_v63 = vpop.f32.mrf.mxu0 }
 0x152   :  { %v443_v1 = vadd.f32 %v1544_v63, %v1972_v41  ;;  %1585 = vmatprep.mubr.bf16.mxu1 %v504_v61  ;;  %v486_v7 = vmax.f32 %v432_v0, 0.0 }
 0x153   :  { %v434_v3 = vpop.f32.mrf.mxu0  ;;  %1586 = vmatmul.mubr.bf16.gmra.mxu1 %v505_v62 }
 0x154   :  { %v435_v4 = vadd.f32 %v1972_v41, %v434_v3  ;;  %v489_v5 = vmax.f32 %v443_v1, 0.0 }
 0x155   :  { %v1547_v6 = vpop.f32.mrf.mxu0 }
 0x156   :  { %v487_v8 = vmax.f32 %v435_v4, 0.0  ;;  %v507_v12 = vpack.c.bf16 %v489_v5, %v488_v9  ;;  %v456_v16 = vadd.f32 %v1547_v6, %v1972_v41 }
 0x157   :  { %v447_v10 = vpop.f32.mrf.mxu0 }
 0x158   :  { %v506_v11 = vpack.c.bf16 %v487_v8, %v486_v7  ;;  %v448_v14 = vadd.f32 %v1972_v41, %v447_v10  ;;  %v492_v22 = vmax.f32 %v456_v16, 0.0 }
 0x159   :  { %v1548_v13 = vpop.f32.mrf.mxu0 }
 0x15a   :  { %v459_v15 = vadd.f32 %v1548_v13, %v1972_v41  ;;  %1589 = vmatprep.mubr.bf16.mxu1 %v506_v11  ;;  %v490_v20 = vmax.f32 %v448_v14, 0.0 }
 0x15b   :  { %v450_v17 = vpop.f32.mrf.mxu0  ;;  %1590 = vmatmul.mubr.bf16.gmra.mxu1 %v507_v12 }
 0x15c   :  { %v451_v18 = vadd.f32 %v1972_v41, %v450_v17  ;;  %v493_v19 = vmax.f32 %v459_v15, 0.0  ;;  %v1746_v41 = vld [vmem:[#allocation10 + $0x20] sm:$0xff]  }
 0x15d   :  { %1651 = vmatprep.subr.bf16.mxu1 %v1746_v41 }
 0x15e   :  { %v491_v21 = vmax.f32 %v451_v18, 0.0  ;;  %v509_v24 = vpack.c.bf16 %v493_v19, %v492_v22  ;;  %1652 = vmatpush3.bf16.msra.mxu1 %v1746_v41 }
 0x15f   :  { %1653 = vmatprep.subr.bf16.mxu1 %v1747_v29 }
 0x160   :  { %v508_v23 = vpack.c.bf16 %v491_v21, %v490_v20 }
 0x162   :  { %1593 = vmatprep.mubr.bf16.mxu1 %v508_v23  ;;  %1654 = vmatpush3.bf16.msra.mxu1 %v1747_v29 }
 0x163   :  { %1594 = vmatmul.mubr.bf16.gmra.mxu1 %v509_v24  ;;  %1655 = vmatprep.subr.bf16.mxu1 %v1748_v30 }
 0x166   :  { %1656 = vmatpush3.bf16.msra.mxu1 %v1748_v30 }
 0x167   :  { %1657 = vmatprep.subr.bf16.mxu1 %v1749_v31 }
 0x16a   :  { %1658 = vmatpush3.bf16.msra.mxu1 %v1749_v31 }
 0x1eb   :  { %v1567_v32 = vpop.f32.mrf.mxu1 }
 0x1ec   :  { %v624_v38 = vadd.f32 %v1567_v32, %v2009_v34 }
 0x1ed   :  { %v615_v33 = vpop.f32.mrf.mxu1 }
 0x1ee   :  { %v616_v36 = vadd.f32 %v2009_v34, %v615_v33  ;;  %v744_v46 = vmax.f32 %v624_v38, 0.0 }
 0x1ef   :  { %v1568_v35 = vpop.f32.mrf.mxu1 }
 0x1f0   :  { %v627_v37 = vadd.f32 %v1568_v35, %v2009_v34  ;;  %v742_v44 = vmax.f32 %v616_v36, 0.0 }
 0x1f1   :  { %v618_v39 = vpop.f32.mrf.mxu1 }
 0x1f2   :  { %v619_v40 = vadd.f32 %v2009_v34, %v618_v39  ;;  %v745_v42 = vmax.f32 %v627_v37, 0.0 }
 0x1f3   :  { %v1571_v43 = vpop.f32.mrf.mxu1 }
 0x1f4   :  { %v743_v45 = vmax.f32 %v619_v40, 0.0  ;;  %v775_v49 = vpack.c.bf16 %v745_v42, %v744_v46  ;;  %v640_v53 = vadd.f32 %v1571_v43, %v2009_v34 }
 0x1f5   :  { %v631_v47 = vpop.f32.mrf.mxu1 }
 0x1f6   :  { %v774_v48 = vpack.c.bf16 %v743_v45, %v742_v44  ;;  %v632_v51 = vadd.f32 %v2009_v34, %v631_v47  ;;  %v748_v60 = vmax.f32 %v640_v53, 0.0 }
 0x1f7   :  { %v1572_v50 = vpop.f32.mrf.mxu1 }
 0x1f8   :  { %v643_v52 = vadd.f32 %v1572_v50, %v2009_v34  ;;  %1613 = vmatprep.mubr.bf16.mxu0 %v774_v48  ;;  %v746_v58 = vmax.f32 %v632_v51, 0.0 }
 0x1f9   :  { %v634_v54 = vpop.f32.mrf.mxu1  ;;  %1614 = vmatmul.mubr.bf16.vlgmr.msra.gmra.mxu0 %v775_v49 }
 0x1fa   :  { %v635_v55 = vadd.f32 %v2009_v34, %v634_v54  ;;  %v749_v56 = vmax.f32 %v643_v52, 0.0 }
 0x1fb   :  { %v1575_v57 = vpop.f32.mrf.mxu1 }
 0x1fc   :  { %v747_v59 = vmax.f32 %v635_v55, 0.0  ;;  %v777_v63 = vpack.c.bf16 %v749_v56, %v748_v60  ;;  %v656_v3 = vadd.f32 %v1575_v57, %v2009_v34 }
 0x1fd   :  { %v647_v61 = vpop.f32.mrf.mxu1 }
 0x1fe   :  { %v776_v62 = vpack.c.bf16 %v747_v59, %v746_v58  ;;  %v648_v1 = vadd.f32 %v2009_v34, %v647_v61  ;;  %v752_v10 = vmax.f32 %v656_v3, 0.0 }
 0x1ff   :  { %v1576_v0 = vpop.f32.mrf.mxu1 }
 0x200   :  { %v659_v2 = vadd.f32 %v1576_v0, %v2009_v34  ;;  %1617 = vmatprep.mubr.bf16.mxu0 %v776_v62  ;;  %v750_v8 = vmax.f32 %v648_v1, 0.0 }
 0x201   :  { %v650_v4 = vpop.f32.mrf.mxu1  ;;  %1618 = vmatmul.mubr.bf16.gmra.mxu0 %v777_v63 }
 0x202   :  { %v651_v5 = vadd.f32 %v2009_v34, %v650_v4  ;;  %v753_v6 = vmax.f32 %v659_v2, 0.0 }
 0x203   :  { %v1579_v7 = vpop.f32.mrf.mxu1 }
 0x204   :  { %v751_v9 = vmax.f32 %v651_v5, 0.0  ;;  %v779_v13 = vpack.c.bf16 %v753_v6, %v752_v10  ;;  %v672_v17 = vadd.f32 %v1579_v7, %v2009_v34 }
 0x205   :  { %v663_v11 = vpop.f32.mrf.mxu1 }
 0x206   :  { %v778_v12 = vpack.c.bf16 %v751_v9, %v750_v8  ;;  %v664_v15 = vadd.f32 %v2009_v34, %v663_v11  ;;  %v756_v24 = vmax.f32 %v672_v17, 0.0 }
 0x207   :  { %v1580_v14 = vpop.f32.mrf.mxu1 }
 0x208   :  { %v675_v16 = vadd.f32 %v1580_v14, %v2009_v34  ;;  %1621 = vmatprep.mubr.bf16.mxu0 %v778_v12  ;;  %v754_v22 = vmax.f32 %v664_v15, 0.0 }
 0x209   :  { %v666_v18 = vpop.f32.mrf.mxu1  ;;  %1622 = vmatmul.mubr.bf16.gmra.mxu0 %v779_v13 }
 0x20a   :  { %v667_v19 = vadd.f32 %v2009_v34, %v666_v18  ;;  %v757_v20 = vmax.f32 %v675_v16, 0.0 }
 0x20b   :  { %v1583_v21 = vpop.f32.mrf.mxu1 }
 0x20c   :  { %v755_v23 = vmax.f32 %v667_v19, 0.0  ;;  %v781_v27 = vpack.c.bf16 %v757_v20, %v756_v24  ;;  %v688_v30 = vadd.f32 %v1583_v21, %v2009_v34  ;;  %v1750_v19 = vld [vmem:[#allocation10] sm:$0xff]  }
 0x20d   :  { %v679_v25 = vpop.f32.mrf.mxu1  ;;  %1659 = vmatprep.subr.bf16.mxu1 %v1750_v19 }
 0x20e   :  { %v780_v26 = vpack.c.bf16 %v755_v23, %v754_v22  ;;  %v680_v41 = vadd.f32 %v2009_v34, %v679_v25  ;;  %v760_v38 = vmax.f32 %v688_v30, 0.0  ;;  %1660 = vmatpush3.bf16.msra.mxu1 %v1750_v19  ;;  %v2046_v22 = vld [vmem:[%s2126_s6] ss:$0 sm:$0xff] }
 0x20f   :  { %v1584_v28 = vpop.f32.mrf.mxu1 }
 0x210   :  { %v691_v29 = vadd.f32 %v1584_v28, %v2009_v34  ;;  %1625 = vmatprep.mubr.bf16.mxu0 %v780_v26  ;;  %v758_v36 = vmax.f32 %v680_v41, 0.0 }
 0x211   :  { %v682_v31 = vpop.f32.mrf.mxu1  ;;  %1626 = vmatmul.mubr.bf16.gmra.mxu0 %v781_v27 }
 0x212   :  { %v683_v32 = vadd.f32 %v2009_v34, %v682_v31  ;;  %v761_v33 = vmax.f32 %v691_v29, 0.0 }
 0x213   :  { %v1587_v35 = vpop.f32.mrf.mxu1 }
 0x214   :  { %v759_v37 = vmax.f32 %v683_v32, 0.0  ;;  %v783_v42 = vpack.c.bf16 %v761_v33, %v760_v38  ;;  %v704_v46 = vadd.f32 %v1587_v35, %v2009_v34 }
 0x215   :  { %v695_v39 = vpop.f32.mrf.mxu1 }
 0x216   :  { %v782_v40 = vpack.c.bf16 %v759_v37, %v758_v36  ;;  %v696_v44 = vadd.f32 %v2009_v34, %v695_v39  ;;  %v764_v53 = vmax.f32 %v704_v46, 0.0 }
 0x217   :  { %v1588_v43 = vpop.f32.mrf.mxu1 }
 0x218   :  { %v707_v45 = vadd.f32 %v1588_v43, %v2009_v34  ;;  %1629 = vmatprep.mubr.bf16.mxu0 %v782_v40  ;;  %v762_v51 = vmax.f32 %v696_v44, 0.0 }
 0x219   :  { %v698_v47 = vpop.f32.mrf.mxu1  ;;  %1630 = vmatmul.mubr.bf16.gmra.mxu0 %v783_v42 }
 0x21a   :  { %v699_v48 = vadd.f32 %v2009_v34, %v698_v47  ;;  %v765_v49 = vmax.f32 %v707_v45, 0.0 }
 0x21b   :  { %v1591_v50 = vpop.f32.mrf.mxu1 }
 0x21c   :  { %v763_v52 = vmax.f32 %v699_v48, 0.0  ;;  %v785_v56 = vpack.c.bf16 %v765_v49, %v764_v53  ;;  %v720_v60 = vadd.f32 %v1591_v50, %v2009_v34 }
 0x21d   :  { %v711_v54 = vpop.f32.mrf.mxu1 }
 0x21e   :  { %v784_v55 = vpack.c.bf16 %v763_v52, %v762_v51  ;;  %v712_v58 = vadd.f32 %v2009_v34, %v711_v54  ;;  %v768_v3 = vmax.f32 %v720_v60, 0.0 }
 0x21f   :  { %v1592_v57 = vpop.f32.mrf.mxu1 }
 0x220   :  { %v723_v59 = vadd.f32 %v1592_v57, %v2009_v34  ;;  %1633 = vmatprep.mubr.bf16.mxu0 %v784_v55  ;;  %v766_v1 = vmax.f32 %v712_v58, 0.0 }
 0x221   :  { %v714_v61 = vpop.f32.mrf.mxu1  ;;  %1634 = vmatmul.mubr.bf16.gmra.mxu0 %v785_v56 }
 0x222   :  { %v715_v62 = vadd.f32 %v2009_v34, %v714_v61  ;;  %v769_v63 = vmax.f32 %v723_v59, 0.0 }
 0x223   :  { %v1595_v0 = vpop.f32.mrf.mxu1 }
 0x224   :  { %v767_v2 = vmax.f32 %v715_v62, 0.0  ;;  %v787_v6 = vpack.c.bf16 %v769_v63, %v768_v3  ;;  %v736_v10 = vadd.f32 %v1595_v0, %v2009_v34 }
 0x225   :  { %v727_v4 = vpop.f32.mrf.mxu1 }
 0x226   :  { %v786_v5 = vpack.c.bf16 %v767_v2, %v766_v1  ;;  %v728_v8 = vadd.f32 %v2009_v34, %v727_v4  ;;  %v772_v16 = vmax.f32 %v736_v10, 0.0 }
 0x227   :  { %v1596_v7 = vpop.f32.mrf.mxu1 }
 0x228   :  { %v739_v9 = vadd.f32 %v1596_v7, %v2009_v34  ;;  %1637 = vmatprep.mubr.bf16.mxu0 %v786_v5  ;;  %v770_v14 = vmax.f32 %v728_v8, 0.0 }
 0x229   :  { %v730_v11 = vpop.f32.mrf.mxu1  ;;  %1638 = vmatmul.mubr.bf16.gmra.mxu0 %v787_v6 }
 0x22a   :  { %v731_v12 = vadd.f32 %v2009_v34, %v730_v11  ;;  %v773_v13 = vmax.f32 %v739_v9, 0.0 }
 0x22c   :  { %v771_v15 = vmax.f32 %v731_v12, 0.0  ;;  %v789_v18 = vpack.c.bf16 %v773_v13, %v772_v16 }
 0x22e   :  { %v788_v17 = vpack.c.bf16 %v771_v15, %v770_v14 }
 0x230   :  { %1641 = vmatprep.mubr.bf16.mxu0 %v788_v17 }
 0x231   :  { %1642 = vmatmul.mubr.bf16.gmra.mxu0 %v789_v18 }
 0x2b9   :  { %v1615_v20 = vpop.f32.mrf.mxu0 }
 0x2ba   :  { %v904_v25 = vadd.f32 %v1615_v20, %v2046_v22 }
 0x2bb   :  { %v895_v21 = vpop.f32.mrf.mxu0 }
 0x2bc   :  { %v896_v34 = vadd.f32 %v2046_v22, %v895_v21  ;;  %v1024_v31 = vmax.f32 %v904_v25, 0.0 }
 0x2bd   :  { %v1616_v23 = vpop.f32.mrf.mxu0 }
 0x2be   :  { %v907_v24 = vadd.f32 %v1616_v23, %v2046_v22  ;;  %v1022_v29 = vmax.f32 %v896_v34, 0.0 }
 0x2bf   :  { %v898_v26 = vpop.f32.mrf.mxu0 }
 0x2c0   :  { %v899_v27 = vadd.f32 %v2046_v22, %v898_v26  ;;  %v1025_v28 = vmax.f32 %v907_v24, 0.0 }
 0x2c1   :  { %v1619_v41 = vpop.f32.mrf.mxu0 }
 0x2c2   :  { %v1023_v30 = vmax.f32 %v899_v27, 0.0  ;;  %v1055_v35 = vpack.c.bf16 %v1025_v28, %v1024_v31  ;;  %v920_v39 = vadd.f32 %v1619_v41, %v2046_v22 }
 0x2c3   :  { %v911_v32 = vpop.f32.mrf.mxu0 }
 0x2c4   :  { %v1054_v33 = vpack.c.bf16 %v1023_v30, %v1022_v29  ;;  %v912_v37 = vadd.f32 %v2046_v22, %v911_v32  ;;  %v1028_v47 = vmax.f32 %v920_v39, 0.0 }
 0x2c5   :  { %v1620_v36 = vpop.f32.mrf.mxu0 }
 0x2c6   :  { %v923_v38 = vadd.f32 %v1620_v36, %v2046_v22  ;;  %1661 = vmatprep.mubr.bf16.mxu1 %v1054_v33  ;;  %v1026_v45 = vmax.f32 %v912_v37, 0.0 }
 0x2c7   :  { %v914_v40 = vpop.f32.mrf.mxu0  ;;  %1662 = vmatmul.mubr.bf16.vlgmr.msra.gmra.mxu1 %v1055_v35 }
 0x2c8   :  { %v915_v42 = vadd.f32 %v2046_v22, %v914_v40  ;;  %v1029_v43 = vmax.f32 %v923_v38, 0.0 }
 0x2c9   :  { %v1623_v44 = vpop.f32.mrf.mxu0 }
 0x2ca   :  { %v1027_v46 = vmax.f32 %v915_v42, 0.0  ;;  %v1057_v50 = vpack.c.bf16 %v1029_v43, %v1028_v47  ;;  %v936_v54 = vadd.f32 %v1623_v44, %v2046_v22 }
 0x2cb   :  { %v927_v48 = vpop.f32.mrf.mxu0 }
 0x2cc   :  { %v1056_v49 = vpack.c.bf16 %v1027_v46, %v1026_v45  ;;  %v928_v52 = vadd.f32 %v2046_v22, %v927_v48  ;;  %v1032_v61 = vmax.f32 %v936_v54, 0.0 }
 0x2cd   :  { %v1624_v51 = vpop.f32.mrf.mxu0 }
 0x2ce   :  { %v939_v53 = vadd.f32 %v1624_v51, %v2046_v22  ;;  %1665 = vmatprep.mubr.bf16.mxu1 %v1056_v49  ;;  %v1030_v59 = vmax.f32 %v928_v52, 0.0 }
 0x2cf   :  { %v930_v55 = vpop.f32.mrf.mxu0  ;;  %1666 = vmatmul.mubr.bf16.gmra.mxu1 %v1057_v50 }
 0x2d0   :  { %v931_v56 = vadd.f32 %v2046_v22, %v930_v55  ;;  %v1033_v57 = vmax.f32 %v939_v53, 0.0 }
 0x2d1   :  { %v1627_v58 = vpop.f32.mrf.mxu0 }
 0x2d2   :  { %v1031_v60 = vmax.f32 %v931_v56, 0.0  ;;  %v1059_v0 = vpack.c.bf16 %v1033_v57, %v1032_v61  ;;  %v952_v4 = vadd.f32 %v1627_v58, %v2046_v22 }
 0x2d3   :  { %v943_v62 = vpop.f32.mrf.mxu0 }
 0x2d4   :  { %v1058_v63 = vpack.c.bf16 %v1031_v60, %v1030_v59  ;;  %v944_v2 = vadd.f32 %v2046_v22, %v943_v62  ;;  %v1036_v11 = vmax.f32 %v952_v4, 0.0 }
 0x2d5   :  { %v1628_v1 = vpop.f32.mrf.mxu0 }
 0x2d6   :  { %v955_v3 = vadd.f32 %v1628_v1, %v2046_v22  ;;  %1669 = vmatprep.mubr.bf16.mxu1 %v1058_v63  ;;  %v1034_v9 = vmax.f32 %v944_v2, 0.0 }
 0x2d7   :  { %v946_v5 = vpop.f32.mrf.mxu0  ;;  %1670 = vmatmul.mubr.bf16.gmra.mxu1 %v1059_v0 }
 0x2d8   :  { %v947_v6 = vadd.f32 %v2046_v22, %v946_v5  ;;  %v1037_v7 = vmax.f32 %v955_v3, 0.0 }
 0x2d9   :  { %v1631_v8 = vpop.f32.mrf.mxu0 }
 0x2da   :  { %v1035_v10 = vmax.f32 %v947_v6, 0.0  ;;  %v1061_v14 = vpack.c.bf16 %v1037_v7, %v1036_v11  ;;  %v968_v18 = vadd.f32 %v1631_v8, %v2046_v22  ;;  %v2083_v6 = vld [vmem:[%s2128_s8] ss:$0 sm:$0xff]  ;;  %s1886_s8 = smov [#allocation11]  }
 0x2db   :  { %v959_v12 = vpop.f32.mrf.mxu0  ;;  %s1339_s15 = sshll.u32 %s1886_s8, 4  ;;  %s1340_s15 = int_to_ptr.vmem [resolvable:$true] %s1339_s15 }
 0x2dc   :  { %v1060_v13 = vpack.c.bf16 %v1035_v10, %v1034_v9  ;;  %v960_v16 = vadd.f32 %v2046_v22, %v959_v12  ;;  %v1040_v25 = vmax.f32 %v968_v18, 0.0  ;;  %s1851_s16 = scalar_lea.vmem %s1340_s15, 4096  ;;  %p1856_p12 = scmp.lt.s32.totalorder %s1340_s15, %s1340_s15 }
 0x2dd   :  { %v1632_v15 = vpop.f32.mrf.mxu0  ;;  %p1852_p11 = scmp.ne.s32.totalorder %s1340_s15, %s1851_s16  ;;  %p1857_p13 = scmp.lt.s32.totalorder %s1851_s16, %s1851_s16 }
 0x2de   :  { %v971_v17 = vadd.f32 %v1632_v15, %v2046_v22  ;;  %1673 = vmatprep.mubr.bf16.mxu1 %v1060_v13  ;;  %v1038_v34 = vmax.f32 %v960_v16, 0.0 }
 0x2df   :  { %v962_v19 = vpop.f32.mrf.mxu0  ;;  %1674 = vmatmul.mubr.bf16.gmra.mxu1 %v1061_v14  ;;  %p1858_p0 = por %p1857_p13, %p1856_p12 }
 0x2e0   :  { %v963_v20 = vadd.f32 %v2046_v22, %v962_v19  ;;  %v1041_v21 = vmax.f32 %v971_v17, 0.0 }
 0x2e1   :  { %v1635_v23 = vpop.f32.mrf.mxu0  ;;  %p1859_p1 = pnand %p1858_p0, %p1852_p11 }
 0x2e2   :  { %v1039_v24 = vmax.f32 %v963_v20, 0.0  ;;  %v1063_v28 = vpack.c.bf16 %v1041_v21, %v1040_v25  ;;  %v984_v31 = vadd.f32 %v1635_v23, %v2046_v22 }
 0x2e3   :  { %v975_v26 = vpop.f32.mrf.mxu0 }
 0x2e4   :  { %v1062_v27 = vpack.c.bf16 %v1039_v24, %v1038_v34  ;;  %v976_v29 = vadd.f32 %v2046_v22, %v975_v26  ;;  %v1044_v39 = vmax.f32 %v984_v31, 0.0 }
 0x2e5   :  { %v1636_v41 = vpop.f32.mrf.mxu0 }
 0x2e6   :  { %v987_v30 = vadd.f32 %v1636_v41, %v2046_v22  ;;  %1677 = vmatprep.mubr.bf16.mxu1 %v1062_v27  ;;  %v1042_v37 = vmax.f32 %v976_v29, 0.0 }
 0x2e7   :  { %v978_v32 = vpop.f32.mrf.mxu0  ;;  %1678 = vmatmul.mubr.bf16.gmra.mxu1 %v1063_v28 }
 0x2e8   :  { %v979_v33 = vadd.f32 %v2046_v22, %v978_v32  ;;  %v1045_v35 = vmax.f32 %v987_v30, 0.0 }
 0x2e9   :  { %v1639_v36 = vpop.f32.mrf.mxu0 }
 0x2ea   :  { %v1043_v38 = vmax.f32 %v979_v33, 0.0  ;;  %v1065_v43 = vpack.c.bf16 %v1045_v35, %v1044_v39  ;;  %v1000_v47 = vadd.f32 %v1639_v36, %v2046_v22 }
 0x2eb   :  { %v991_v40 = vpop.f32.mrf.mxu0 }
 0x2ec   :  { %v1064_v42 = vpack.c.bf16 %v1043_v38, %v1042_v37  ;;  %v992_v45 = vadd.f32 %v2046_v22, %v991_v40  ;;  %v1048_v54 = vmax.f32 %v1000_v47, 0.0 }
 0x2ed   :  { %v1640_v44 = vpop.f32.mrf.mxu0 }
 0x2ee   :  { %v1003_v46 = vadd.f32 %v1640_v44, %v2046_v22  ;;  %1681 = vmatprep.mubr.bf16.mxu1 %v1064_v42  ;;  %v1046_v52 = vmax.f32 %v992_v45, 0.0 }
 0x2ef   :  { %v994_v48 = vpop.f32.mrf.mxu0  ;;  %1682 = vmatmul.mubr.bf16.gmra.mxu1 %v1065_v43 }
 0x2f0   :  { %v995_v49 = vadd.f32 %v2046_v22, %v994_v48  ;;  %v1049_v50 = vmax.f32 %v1003_v46, 0.0 }
 0x2f1   :  { %v1643_v51 = vpop.f32.mrf.mxu0 }
 0x2f2   :  { %v1047_v53 = vmax.f32 %v995_v49, 0.0  ;;  %v1067_v57 = vpack.c.bf16 %v1049_v50, %v1048_v54  ;;  %v1016_v61 = vadd.f32 %v1643_v51, %v2046_v22 }
 0x2f3   :  { %v1007_v55 = vpop.f32.mrf.mxu0 }
 0x2f4   :  { %v1066_v56 = vpack.c.bf16 %v1047_v53, %v1046_v52  ;;  %v1008_v59 = vadd.f32 %v2046_v22, %v1007_v55  ;;  %v1052_v3 = vmax.f32 %v1016_v61, 0.0 }
 0x2f5   :  { %v1644_v58 = vpop.f32.mrf.mxu0 }
 0x2f6   :  { %v1019_v60 = vadd.f32 %v1644_v58, %v2046_v22  ;;  %1685 = vmatprep.mubr.bf16.mxu1 %v1066_v56  ;;  %v1050_v1 = vmax.f32 %v1008_v59, 0.0 }
 0x2f7   :  { %v1010_v62 = vpop.f32.mrf.mxu0  ;;  %1686 = vmatmul.mubr.bf16.gmra.mxu1 %v1067_v57 }
 0x2f8   :  { %v1011_v63 = vadd.f32 %v2046_v22, %v1010_v62  ;;  %v1053_v0 = vmax.f32 %v1019_v60, 0.0 }
 0x2fa   :  { %v1051_v2 = vmax.f32 %v1011_v63, 0.0  ;;  %v1069_v5 = vpack.c.bf16 %v1053_v0, %v1052_v3 }
 0x2fc   :  { %v1068_v4 = vpack.c.bf16 %v1051_v2, %v1050_v1 }
 0x2fe   :  { %1689 = vmatprep.mubr.bf16.mxu1 %v1068_v4 }
 0x2ff   :  { %1690 = vmatmul.mubr.bf16.gmra.mxu1 %v1069_v5 }
 0x387   :  { %v1663_v7 = vpop.f32.mrf.mxu1 }
 0x388   :  { %v1184_v8 = vadd.f32 %v1663_v7, %v2083_v6 }
 0x389   :  { %v1175_v9 = vpop.f32.mrf.mxu1 }
 0x38a   :  { %1304 = vst [vmem:[#allocation11 + $0x10] sm:$0xff] %v1184_v8  ;;  %v1176_v22 = vadd.f32 %v2083_v6, %v1175_v9 }
 0x38b   :  { %v1664_v10 = vpop.f32.mrf.mxu1 }
 0x38c   :  { %1302 = vst [vmem:[#allocation11] sm:$0xff] %v1176_v22  ;;  %v1187_v11 = vadd.f32 %v1664_v10, %v2083_v6 }
 0x38d   :  { %v1178_v12 = vpop.f32.mrf.mxu1 }
 0x38e   :  { %1305 = vst [vmem:[#allocation11 + $0x18] sm:$0xff] %v1187_v11  ;;  %v1179_v13 = vadd.f32 %v2083_v6, %v1178_v12 }
 0x38f   :  { %v1667_v14 = vpop.f32.mrf.mxu1 }
 0x390   :  { %1303 = vst [vmem:[#allocation11 + $0x8] sm:$0xff] %v1179_v13  ;;  %v1200_v15 = vadd.f32 %v1667_v14, %v2083_v6 }
 0x391   :  { %v1191_v16 = vpop.f32.mrf.mxu1 }
 0x392   :  { %1308 = vst [vmem:[#allocation11 + $0x30] sm:$0xff] %v1200_v15  ;;  %v1192_v17 = vadd.f32 %v2083_v6, %v1191_v16 }
 0x393   :  { %v1668_v18 = vpop.f32.mrf.mxu1 }
 0x394   :  { %1306 = vst [vmem:[#allocation11 + $0x20] sm:$0xff] %v1192_v17  ;;  %v1203_v19 = vadd.f32 %v1668_v18, %v2083_v6 }
 0x395   :  { %v1194_v20 = vpop.f32.mrf.mxu1 }
 0x396   :  { %1309 = vst [vmem:[#allocation11 + $0x38] sm:$0xff] %v1203_v19  ;;  %v1195_v21 = vadd.f32 %v2083_v6, %v1194_v20 }
 0x397   :  { %v1671_v23 = vpop.f32.mrf.mxu1 }
 0x398   :  { %1307 = vst [vmem:[#allocation11 + $0x28] sm:$0xff] %v1195_v21  ;;  %v1216_v34 = vadd.f32 %v1671_v23, %v2083_v6 }
 0x399   :  { %v1207_v24 = vpop.f32.mrf.mxu1 }
 0x39a   :  { %1312 = vst [vmem:[#allocation11 + $0x50] sm:$0xff] %v1216_v34  ;;  %v1208_v25 = vadd.f32 %v2083_v6, %v1207_v24 }
 0x39b   :  { %v1672_v26 = vpop.f32.mrf.mxu1 }
 0x39c   :  { %1310 = vst [vmem:[#allocation11 + $0x40] sm:$0xff] %v1208_v25  ;;  %v1219_v27 = vadd.f32 %v1672_v26, %v2083_v6 }
 0x39d   :  { %v1210_v28 = vpop.f32.mrf.mxu1 }
 0x39e   :  { %1313 = vst [vmem:[#allocation11 + $0x58] sm:$0xff] %v1219_v27  ;;  %v1211_v41 = vadd.f32 %v2083_v6, %v1210_v28 }
 0x39f   :  { %v1675_v29 = vpop.f32.mrf.mxu1 }
 0x3a0   :  { %1311 = vst [vmem:[#allocation11 + $0x48] sm:$0xff] %v1211_v41  ;;  %v1232_v30 = vadd.f32 %v1675_v29, %v2083_v6 }
 0x3a1   :  { %v1223_v31 = vpop.f32.mrf.mxu1 }
 0x3a2   :  { %1316 = vst [vmem:[#allocation11 + $0x70] sm:$0xff] %v1232_v30  ;;  %v1224_v32 = vadd.f32 %v2083_v6, %v1223_v31 }
 0x3a3   :  { %v1676_v33 = vpop.f32.mrf.mxu1 }
 0x3a4   :  { %1314 = vst [vmem:[#allocation11 + $0x60] sm:$0xff] %v1224_v32  ;;  %v1235_v35 = vadd.f32 %v1676_v33, %v2083_v6 }
 0x3a5   :  { %v1226_v36 = vpop.f32.mrf.mxu1 }
 0x3a6   :  { %1317 = vst [vmem:[#allocation11 + $0x78] sm:$0xff] %v1235_v35  ;;  %v1227_v37 = vadd.f32 %v2083_v6, %v1226_v36 }
 0x3a7   :  { %v1679_v38 = vpop.f32.mrf.mxu1 }
 0x3a8   :  { %1315 = vst [vmem:[#allocation11 + $0x68] sm:$0xff] %v1227_v37  ;;  %v1248_v39 = vadd.f32 %v1679_v38, %v2083_v6 }
 0x3a9   :  { %v1239_v40 = vpop.f32.mrf.mxu1 }
 0x3aa   :  { %1320 = vst [vmem:[#allocation11 + $0x90] sm:$0xff] %v1248_v39  ;;  %v1240_v42 = vadd.f32 %v2083_v6, %v1239_v40 }
 0x3ab   :  { %v1680_v43 = vpop.f32.mrf.mxu1 }
 0x3ac   :  { %1318 = vst [vmem:[#allocation11 + $0x80] sm:$0xff] %v1240_v42  ;;  %v1251_v44 = vadd.f32 %v1680_v43, %v2083_v6 }
 0x3ad   :  { %v1242_v45 = vpop.f32.mrf.mxu1 }
 0x3ae   :  { %1321 = vst [vmem:[#allocation11 + $0x98] sm:$0xff] %v1251_v44  ;;  %v1243_v46 = vadd.f32 %v2083_v6, %v1242_v45 }
 0x3af   :  { %v1683_v47 = vpop.f32.mrf.mxu1 }
 0x3b0   :  { %1319 = vst [vmem:[#allocation11 + $0x88] sm:$0xff] %v1243_v46  ;;  %v1264_v48 = vadd.f32 %v1683_v47, %v2083_v6 }
 0x3b1   :  { %v1255_v49 = vpop.f32.mrf.mxu1 }
 0x3b2   :  { %1324 = vst [vmem:[#allocation11 + $0xb0] sm:$0xff] %v1264_v48  ;;  %v1256_v50 = vadd.f32 %v2083_v6, %v1255_v49 }
 0x3b3   :  { %v1684_v51 = vpop.f32.mrf.mxu1 }
 0x3b4   :  { %1322 = vst [vmem:[#allocation11 + $0xa0] sm:$0xff] %v1256_v50  ;;  %v1267_v52 = vadd.f32 %v1684_v51, %v2083_v6 }
 0x3b5   :  { %v1258_v53 = vpop.f32.mrf.mxu1 }
 0x3b6   :  { %1325 = vst [vmem:[#allocation11 + $0xb8] sm:$0xff] %v1267_v52  ;;  %v1259_v54 = vadd.f32 %v2083_v6, %v1258_v53 }
 0x3b7   :  { %v1687_v55 = vpop.f32.mrf.mxu1 }
 0x3b8   :  { %1323 = vst [vmem:[#allocation11 + $0xa8] sm:$0xff] %v1259_v54  ;;  %v1280_v56 = vadd.f32 %v1687_v55, %v2083_v6 }
 0x3b9   :  { %v1271_v57 = vpop.f32.mrf.mxu1 }
 0x3ba   :  { %1328 = vst [vmem:[#allocation11 + $0xd0] sm:$0xff] %v1280_v56  ;;  %v1272_v58 = vadd.f32 %v2083_v6, %v1271_v57 }
 0x3bb   :  { %v1688_v59 = vpop.f32.mrf.mxu1 }
 0x3bc   :  { %1326 = vst [vmem:[#allocation11 + $0xc0] sm:$0xff] %v1272_v58  ;;  %v1283_v60 = vadd.f32 %v1688_v59, %v2083_v6 }
 0x3bd   :  { %v1274_v61 = vpop.f32.mrf.mxu1 }
 0x3be   :  { %1329 = vst [vmem:[#allocation11 + $0xd8] sm:$0xff] %v1283_v60  ;;  %v1275_v62 = vadd.f32 %v2083_v6, %v1274_v61 }
 0x3bf   :  { %v1691_v63 = vpop.f32.mrf.mxu1 }
 0x3c0   :  { %1327 = vst [vmem:[#allocation11 + $0xc8] sm:$0xff] %v1275_v62  ;;  %v1296_v0 = vadd.f32 %v1691_v63, %v2083_v6 }
 0x3c1   :  { %v1287_v1 = vpop.f32.mrf.mxu1 }
 0x3c2   :  { %1332 = vst [vmem:[#allocation11 + $0xf0] sm:$0xff] %v1296_v0  ;;  %v1288_v2 = vadd.f32 %v2083_v6, %v1287_v1 }
 0x3c3   :  { %v1692_v3 = vpop.f32.mrf.mxu1 }
 0x3c4   :  { %1330 = vst [vmem:[#allocation11 + $0xe0] sm:$0xff] %v1288_v2  ;;  %v1299_v4 = vadd.f32 %v1692_v3, %v2083_v6 }
 0x3c5   :  { %v1290_v5 = vpop.f32.mrf.mxu1 }
 0x3c6   :  { %1333 = vst [vmem:[#allocation11 + $0xf8] sm:$0xff] %v1299_v4  ;;  %v1291_v7 = vadd.f32 %v2083_v6, %v1290_v5 }
 0x3c8   :  { %1331 = vst [vmem:[#allocation11 + $0xe8] sm:$0xff] %v1291_v7 }
 0x3c9   :  { %1862 = shalt.err (!%p1859_p1)
}
 0x3ca   :  { %s1887_s17 = smov 128   ;;  %s1888_s18 = smov 8  }
 0x3cb   :  { %1345 = dma.vmem_to_hbm [thread:$0]  %s1340_s15, 4096, %s2129_s9, [#allocation4], %s1887_s17, %s1887_s17, %s1888_s18  }
 0x3cc   :  { %1877 = dma.done.wait [#allocation4], 4096  }
 0x3cd   :  { %1878 = vsyncadd [#allocation4], 4294963200 }
 0x3ce   :  { %1349 = vsyncpa [#allocation3], 1 }
 0x3cf   :  { %1350 = vsyncpa [#allocation6], 1 }
 0x3d0   :  { %1351 = vsyncpa [#allocation9], 1 }
 0x3d1   :  { %1352 = vsyncpa [#allocation4], 1 }

// kernel: tpu_custom_call.1
= control target key start
LH: loop header
LB: loop body
LE: loop exit
PB: predicated region body
PF: predicated region fallthrough
CT: control target
= control target key end

     0   :  { %14 = vsyncpa [#allocation3], 0  ;;  %s2120_s0 = inlined_call_operand.hbm [shape: bf16[256,128], index: 0, kind: input, shape index: {}]   ;;  %s2121_s1 = inlined_call_operand.hbm [shape: bf16[128,128], index: 1, kind: input, shape index: {}]   ;;  %s2122_s2 = inlined_call_operand.vmem [shape: f32[1,128], index: 2, kind: input, shape index: {}]   ;;  %s2123_s3 = inlined_call_operand.hbm [shape: bf16[128,128], index: 3, kind: input, shape index: {}]   ;;  %s2124_s4 = inlined_call_operand.vmem [shape: f32[1,128], index: 4, kind: input, shape index: {}]   ;;  %s2125_s5 = inlined_call_operand.hbm [shape: bf16[128,128], index: 5, kind: input, shape index: {}]   ;;  %s2126_s6 = inlined_call_operand.vmem [shape: f32[1,128], index: 6, kind: input, shape index: {}]   ;;  %s2127_s7 = inlined_call_operand.hbm [shape: bf16[128,128], index: 7, kind: input, shape index: {}]   ;;  %s2128_s8 = inlined_call_operand.vmem [shape: f32[1,128], index: 8, kind: input, shape index: {}]   ;;  %s2129_s9 = inlined_call_operand.hbm [shape: f32[256,128], index: 9, kind: output, shape index: {}]  }
   0x1   :  { %15 = vsyncpa [#allocation6], 0 }
   0x2   :  { %16 = vsyncpa [#allocation9], 0 }
   0x3   :  { %17 = vsyncpa [#allocation4], 0  ;;  %s1879_s30 = smov [#allocation5]   ;;  %s1880_s11 = smov [#allocation8]  }
   0x4   :  { %s35_s10 = sshll.u32 %s1879_s30, 4  ;;  %s63_s12 = sshll.u32 %s1880_s11, 4  ;;  %s36_s10 = int_to_ptr.vmem [resolvable:$true] %s35_s10  ;;  %s64_s12 = int_to_ptr.vmem [resolvable:$true] %s63_s12 }
   0x5   :  { %s1759_s13 = scalar_lea.vmem %s36_s10, 1024  ;;  %p1764_p1 = scmp.lt.s32.totalorder %s36_s10, %s36_s10 }
   0x6   :  { %p1760_p0 = scmp.ne.s32.totalorder %s36_s10, %s1759_s13  ;;  %p1765_p2 = scmp.lt.s32.totalorder %s1759_s13, %s1759_s13 }
   0x8   :  { %p1766_p3 = por %p1765_p2, %p1764_p1 }
   0xa   :  { %p1767_p4 = pnand %p1766_p3, %p1760_p0 }
   0xc   :  { %1770 = shalt.err (!%p1767_p4)
}
   0xd   :  { %s1881_s14 = smov 64   ;;  %s1882_s15 = smov 4  }
   0xe   :  { %41 = dma.hbm_to_vmem [thread:$0]  %s2121_s1, 1024, %s36_s10, [#allocation6], %s1881_s14, %s1881_s14, %s1882_s15  }
   0xf   :  { %s1779_s18 = scalar_lea.vmem %s64_s12, 1024  ;;  %p1784_p6 = scmp.lt.s32.totalorder %s64_s12, %s64_s12 }
  0x10   :  { %p1780_p5 = scmp.ne.s32.totalorder %s64_s12, %s1779_s18  ;;  %p1785_p7 = scmp.lt.s32.totalorder %s1779_s18, %s1779_s18 }
  0x12   :  { %p1786_p8 = por %p1785_p7, %p1784_p6 }
  0x14   :  { %p1787_p9 = pnand %p1786_p8, %p1780_p5 }
  0x16   :  { %1790 = shalt.err (!%p1787_p9)
}
  0x17   :  { %69 = dma.hbm_to_vmem [thread:$0]  %s2125_s5, 1024, %s64_s12, [#allocation9], %s1881_s14, %s1881_s14, %s1882_s15  }
  0x18   :  { %s1883_s21 = smov [#allocation2]   ;;  %s1884_s23 = smov [#allocation7]  }
  0x19   :  { %s23_s22 = sshll.u32 %s1883_s21, 4  ;;  %s49_s24 = sshll.u32 %s1884_s23, 4  ;;  %s24_s22 = int_to_ptr.vmem [resolvable:$true] %s23_s22  ;;  %s50_s24 = int_to_ptr.vmem [resolvable:$true] %s49_s24 }
  0x1a   :  { %s1799_s1 = scalar_lea.vmem %s24_s22, 2048  ;;  %p1804_p11 = scmp.lt.s32.totalorder %s24_s22, %s24_s22 }
  0x1b   :  { %p1800_p10 = scmp.ne.s32.totalorder %s24_s22, %s1799_s1  ;;  %p1805_p12 = scmp.lt.s32.totalorder %s1799_s1, %s1799_s1 }
  0x1d   :  { %p1806_p13 = por %p1805_p12, %p1804_p11 }
  0x1f   :  { %p1807_p0 = pnand %p1806_p13, %p1800_p10 }
  0x21   :  { %1810 = shalt.err (!%p1807_p0)
}
  0x22   :  { %29 = dma.hbm_to_vmem [thread:$0]  %s2120_s0, 2048, %s24_s22, [#allocation3], %s1881_s14, %s1881_s14, %s1882_s15  }
  0x23   :  { %s1819_s5 = scalar_lea.vmem %s50_s24, 1024  ;;  %p1824_p2 = scmp.lt.s32.totalorder %s50_s24, %s50_s24 }
  0x24   :  { %p1820_p1 = scmp.ne.s32.totalorder %s50_s24, %s1819_s5  ;;  %p1825_p3 = scmp.lt.s32.totalorder %s1819_s5, %s1819_s5 }
  0x26   :  { %p1826_p4 = por %p1825_p3, %p1824_p2 }
  0x28   :  { %p1827_p5 = pnand %p1826_p4, %p1820_p1 }
  0x2a   :  { %1830 = shalt.err (!%p1827_p5)
}
  0x2b   :  { %55 = dma.hbm_to_vmem [thread:$0]  %s2123_s3, 1024, %s50_s24, [#allocation6], %s1881_s14, %s1881_s14, %s1882_s15  }
  0x2c   :  { %s1885_s29 = smov [#allocation10]  }
  0x2d   :  { %s77_s30 = sshll.u32 %s1885_s29, 4  ;;  %s78_s30 = int_to_ptr.vmem [resolvable:$true] %s77_s30 }
  0x2e   :  { %s1839_s10 = scalar_lea.vmem %s78_s30, 1024  ;;  %p1844_p7 = scmp.lt.s32.totalorder %s78_s30, %s78_s30 }
  0x2f   :  { %p1840_p6 = scmp.ne.s32.totalorder %s78_s30, %s1839_s10  ;;  %p1845_p8 = scmp.lt.s32.totalorder %s1839_s10, %s1839_s10 }
  0x31   :  { %p1846_p9 = por %p1845_p8, %p1844_p7 }
  0x33   :  { %p1847_p10 = pnand %p1846_p9, %p1840_p6 }
  0x35   :  { %1850 = shalt.err (!%p1847_p10)
}
  0x36   :  { %83 = dma.hbm_to_vmem [thread:$0]  %s2127_s7, 1024, %s78_s30, [#allocation9], %s1881_s14, %s1881_s14, %s1882_s15  }
  0x37   :  { %1871 = dma.done.wait [#allocation3], 2048  }
  0x38   :  { %1872 = vsyncadd [#allocation3], 4294965248 }
  0x39   :  { %1873 = dma.done.wait [#allocation6], 2048  }
  0x3a   :  { %1874 = vsyncadd [#allocation6], 4294965248 }
  0x3b   :  { %1875 = dma.done.wait [#allocation9], 2048  }
  0x3c   :  { %1876 = vsyncadd [#allocation9], 4294965248  ;;  %v1703_v0 = vld [vmem:[#allocation5 + $0x38] sm:$0xff]   ;;  %v1704_v1 = vld [vmem:[#allocation5 + $0x30] sm:$0xff]  }
  0x3d   :  { %1501 = vmatprep.subr.bf16.mxu0 %v1703_v0  ;;  %v1705_v2 = vld [vmem:[#allocation5 + $0x28] sm:$0xff]   ;;  %v1706_v3 = vld [vmem:[#allocation5 + $0x20] sm:$0xff]   ;;  %v1707_v5 = vld [vmem:[#allocation5 + $0x18] sm:$0xff]  }
  0x3e   :  { %1502 = vmatpush3.bf16.msra.mxu0 %v1703_v0  ;;  %v1711_v4 = vld [vmem:[#allocation2] sm:$0xff]   ;;  %v1708_v6 = vld [vmem:[#allocation5 + $0x10] sm:$0xff]   ;;  %v1709_v7 = vld [vmem:[#allocation5 + $0x8] sm:$0xff]  }
  0x3f   :  { %1503 = vmatprep.subr.bf16.mxu0 %v1704_v1  ;;  %1517 = vmatprep.mubr.bf16.mxu0 %v1711_v4  ;;  %v1710_v8 = vld [vmem:[#allocation5] sm:$0xff]   ;;  %v1727_v9 = vld [vmem:[#allocation7 + $0x38] sm:$0xff]   ;;  %v1728_v10 = vld [vmem:[#allocation7 + $0x30] sm:$0xff]  }
  0x40   :  { %1549 = vmatprep.subr.bf16.mxu1 %v1727_v9  ;;  %v1712_v11 = vld [vmem:[#allocation2 + $0x8] sm:$0xff]   ;;  %v1713_v13 = vld [vmem:[#allocation2 + $0x10] sm:$0xff]   ;;  %v1730_v14 = vld [vmem:[#allocation7 + $0x20] sm:$0xff]  }
  0x41   :  { %1550 = vmatpush3.bf16.msra.mxu1 %v1727_v9  ;;  %v1729_v12 = vld [vmem:[#allocation7 + $0x28] sm:$0xff]   ;;  %v1731_v15 = vld [vmem:[#allocation7 + $0x18] sm:$0xff]   ;;  %v1715_v17 = vld [vmem:[#allocation2 + $0x20] sm:$0xff]  }
  0x42   :  { %1504 = vmatpush3.bf16.msra.mxu0 %v1704_v1  ;;  %1551 = vmatprep.subr.bf16.mxu1 %v1728_v10  ;;  %v1714_v16 = vld [vmem:[#allocation2 + $0x18] sm:$0xff]   ;;  %v1716_v18 = vld [vmem:[#allocation2 + $0x28] sm:$0xff]   ;;  %v1717_v19 = vld [vmem:[#allocation2 + $0x30] sm:$0xff]  }
  0x43   :  { %1505 = vmatprep.subr.bf16.mxu0 %v1705_v2  ;;  %v1718_v20 = vld [vmem:[#allocation2 + $0x38] sm:$0xff]   ;;  %v1719_v21 = vld [vmem:[#allocation2 + $0x40] sm:$0xff]   ;;  %v1720_v22 = vld [vmem:[#allocation2 + $0x48] sm:$0xff]  }
  0x44   :  { %v1721_v23 = vld [vmem:[#allocation2 + $0x50] sm:$0xff]   ;;  %v1722_v24 = vld [vmem:[#allocation2 + $0x58] sm:$0xff]   ;;  %v1723_v25 = vld [vmem:[#allocation2 + $0x60] sm:$0xff]  }
  0x45   :  { %1552 = vmatpush3.bf16.msra.mxu1 %v1728_v10  ;;  %v1724_v26 = vld [vmem:[#allocation2 + $0x68] sm:$0xff]   ;;  %v1725_v27 = vld [vmem:[#allocation2 + $0x70] sm:$0xff]   ;;  %v1726_v28 = vld [vmem:[#allocation2 + $0x78] sm:$0xff]  }
  0x46   :  { %1506 = vmatpush3.bf16.msra.mxu0 %v1705_v2  ;;  %1553 = vmatprep.subr.bf16.mxu1 %v1729_v12  ;;  %v1732_v29 = vld [vmem:[#allocation7 + $0x10] sm:$0xff]   ;;  %v1733_v30 = vld [vmem:[#allocation7 + $0x8] sm:$0xff]   ;;  %v1734_v31 = vld [vmem:[#allocation7] sm:$0xff]  }
  0x47   :  { %1507 = vmatprep.subr.bf16.mxu0 %v1706_v3  ;;  %v1735_v32 = vld [vmem:[#allocation8 + $0x38] sm:$0xff]   ;;  %v1736_v33 = vld [vmem:[#allocation8 + $0x30] sm:$0xff]   ;;  %v1737_v34 = vld [vmem:[#allocation8 + $0x28] sm:$0xff]  }
  0x48   :  { %v1738_v35 = vld [vmem:[#allocation8 + $0x20] sm:$0xff]   ;;  %v1739_v36 = vld [vmem:[#allocation8 + $0x18] sm:$0xff]   ;;  %v1740_v37 = vld [vmem:[#allocation8 + $0x10] sm:$0xff]  }
  0x49   :  { %1554 = vmatpush3.bf16.msra.mxu1 %v1729_v12  ;;  %v1741_v38 = vld [vmem:[#allocation8 + $0x8] sm:$0xff]   ;;  %v1972_v41 = vld [vmem:[%s2122_s2] ss:$0 sm:$0xff] }
  0x4a   :  { %1508 = vmatpush3.bf16.msra.mxu0 %v1706_v3  ;;  %1555 = vmatprep.subr.bf16.mxu1 %v1730_v14 }
  0x4b   :  { %1509 = vmatprep.subr.bf16.mxu0 %v1707_v5 }
  0x4d   :  { %1556 = vmatpush3.bf16.msra.mxu1 %v1730_v14 }
  0x4e   :  { %1510 = vmatpush3.bf16.msra.mxu0 %v1707_v5  ;;  %1557 = vmatprep.subr.bf16.mxu1 %v1731_v15 }
  0x4f   :  { %1511 = vmatprep.subr.bf16.mxu0 %v1708_v6 }
  0x51   :  { %1558 = vmatpush3.bf16.msra.mxu1 %v1731_v15 }
  0x52   :  { %1512 = vmatpush3.bf16.msra.mxu0 %v1708_v6  ;;  %1559 = vmatprep.subr.bf16.mxu1 %v1732_v29 }
  0x53   :  { %1513 = vmatprep.subr.bf16.mxu0 %v1709_v7 }
  0x55   :  { %1560 = vmatpush3.bf16.msra.mxu1 %v1732_v29 }
  0x56   :  { %1514 = vmatpush3.bf16.msra.mxu0 %v1709_v7  ;;  %1561 = vmatprep.subr.bf16.mxu1 %v1733_v30 }
  0x57   :  { %1515 = vmatprep.subr.bf16.mxu0 %v1710_v8 }
  0x59   :  { %1562 = vmatpush3.bf16.msra.mxu1 %v1733_v30 }
  0x5a   :  { %1516 = vmatpush3.bf16.msra.mxu0 %v1710_v8  ;;  %1563 = vmatprep.subr.bf16.mxu1 %v1734_v31 }
  0x5b   :  { %1597 = vmatprep.subr.bf16.mxu0 %v1735_v32 }
  0x5d   :  { %1518 = vmatmul.mubr.bf16.vlgmr.msra.gmra.mxu0 %v1712_v11  ;;  %1564 = vmatpush3.bf16.msra.mxu1 %v1734_v31 }
  0x5e   :  { %1521 = vmatprep.mubr.bf16.mxu0 %v1713_v13  ;;  %1598 = vmatpush3.bf16.msra.mxu0 %v1735_v32 }
  0x5f   :  { %1599 = vmatprep.subr.bf16.mxu0 %v1736_v33 }
  0x62   :  { %1600 = vmatpush3.bf16.msra.mxu0 %v1736_v33 }
  0x63   :  { %1601 = vmatprep.subr.bf16.mxu0 %v1737_v34 }
  0x65   :  { %1522 = vmatmul.mubr.bf16.gmra.mxu0 %v1714_v16 }
  0x66   :  { %1525 = vmatprep.mubr.bf16.mxu0 %v1715_v17  ;;  %1602 = vmatpush3.bf16.msra.mxu0 %v1737_v34 }
  0x67   :  { %1603 = vmatprep.subr.bf16.mxu0 %v1738_v35 }
  0x6a   :  { %1604 = vmatpush3.bf16.msra.mxu0 %v1738_v35 }
  0x6b   :  { %1605 = vmatprep.subr.bf16.mxu0 %v1739_v36 }
  0x6d   :  { %1526 = vmatmul.mubr.bf16.gmra.mxu0 %v1716_v18 }
  0x6e   :  { %1529 = vmatprep.mubr.bf16.mxu0 %v1717_v19  ;;  %1606 = vmatpush3.bf16.msra.mxu0 %v1739_v36 }
  0x6f   :  { %1607 = vmatprep.subr.bf16.mxu0 %v1740_v37 }
  0x72   :  { %1608 = vmatpush3.bf16.msra.mxu0 %v1740_v37 }
  0x73   :  { %1609 = vmatprep.subr.bf16.mxu0 %v1741_v38 }
  0x75   :  { %1530 = vmatmul.mubr.bf16.gmra.mxu0 %v1718_v20 }
  0x76   :  { %1533 = vmatprep.mubr.bf16.mxu0 %v1719_v21  ;;  %1610 = vmatpush3.bf16.msra.mxu0 %v1741_v38 }
  0x7d   :  { %1534 = vmatmul.mubr.bf16.gmra.mxu0 %v1720_v22 }
  0x7e   :  { %1537 = vmatprep.mubr.bf16.mxu0 %v1721_v23 }
  0x85   :  { %1538 = vmatmul.mubr.bf16.gmra.mxu0 %v1722_v24 }
  0x86   :  { %1541 = vmatprep.mubr.bf16.mxu0 %v1723_v25 }
  0x8d   :  { %1542 = vmatmul.mubr.bf16.gmra.mxu0 %v1724_v26 }
  0x8e   :  { %1545 = vmatprep.mubr.bf16.mxu0 %v1725_v27 }
  0x95   :  { %1546 = vmatmul.mubr.bf16.gmra.mxu0 %v1726_v28 }
 0x11d   :  { %v1519_v39 = vpop.f32.mrf.mxu0 }
 0x11e   :  { %v344_v45 = vadd.f32 %v1519_v39, %v1972_v41 }
 0x11f   :  { %v335_v40 = vpop.f32.mrf.mxu0 }
 0x120   :  { %v336_v43 = vadd.f32 %v1972_v41, %v335_v40  ;;  %v464_v52 = vmax.f32 %v344_v45, 0.0 }
 0x121   :  { %v1520_v42 = vpop.f32.mrf.mxu0 }
 0x122   :  { %v347_v44 = vadd.f32 %v1520_v42, %v1972_v41  ;;  %v462_v50 = vmax.f32 %v336_v43, 0.0 }
 0x123   :  { %v338_v46 = vpop.f32.mrf.mxu0 }
 0x124   :  { %v339_v47 = vadd.f32 %v1972_v41, %v338_v46  ;;  %v465_v48 = vmax.f32 %v347_v44, 0.0 }
 0x125   :  { %v1523_v49 = vpop.f32.mrf.mxu0 }
 0x126   :  { %v463_v51 = vmax.f32 %v339_v47, 0.0  ;;  %v495_v55 = vpack.c.bf16 %v465_v48, %v464_v52  ;;  %v360_v59 = vadd.f32 %v1523_v49, %v1972_v41 }
 0x127   :  { %v351_v53 = vpop.f32.mrf.mxu0 }
 0x128   :  { %v494_v54 = vpack.c.bf16 %v463_v51, %v462_v50  ;;  %v352_v57 = vadd.f32 %v1972_v41, %v351_v53  ;;  %v468_v2 = vmax.f32 %v360_v59, 0.0 }
 0x129   :  { %v1524_v56 = vpop.f32.mrf.mxu0 }
 0x12a   :  { %v363_v58 = vadd.f32 %v1524_v56, %v1972_v41  ;;  %1565 = vmatprep.mubr.bf16.mxu1 %v494_v54  ;;  %v466_v0 = vmax.f32 %v352_v57, 0.0 }
 0x12b   :  { %v354_v60 = vpop.f32.mrf.mxu0  ;;  %1566 = vmatmul.mubr.bf16.vlgmr.msra.gmra.mxu1 %v495_v55 }
 0x12c   :  { %v355_v61 = vadd.f32 %v1972_v41, %v354_v60  ;;  %v469_v62 = vmax.f32 %v363_v58, 0.0 }
 0x12d   :  { %v1527_v63 = vpop.f32.mrf.mxu0 }
 0x12e   :  { %v467_v1 = vmax.f32 %v355_v61, 0.0  ;;  %v497_v5 = vpack.c.bf16 %v469_v62, %v468_v2  ;;  %v376_v9 = vadd.f32 %v1527_v63, %v1972_v41 }
 0x12f   :  { %v367_v3 = vpop.f32.mrf.mxu0 }
 0x130   :  { %v496_v4 = vpack.c.bf16 %v467_v1, %v466_v0  ;;  %v368_v7 = vadd.f32 %v1972_v41, %v367_v3  ;;  %v472_v16 = vmax.f32 %v376_v9, 0.0 }
 0x131   :  { %v1528_v6 = vpop.f32.mrf.mxu0 }
 0x132   :  { %v379_v8 = vadd.f32 %v1528_v6, %v1972_v41  ;;  %1569 = vmatprep.mubr.bf16.mxu1 %v496_v4  ;;  %v470_v14 = vmax.f32 %v368_v7, 0.0 }
 0x133   :  { %v370_v10 = vpop.f32.mrf.mxu0  ;;  %1570 = vmatmul.mubr.bf16.gmra.mxu1 %v497_v5 }
 0x134   :  { %v371_v11 = vadd.f32 %v1972_v41, %v370_v10  ;;  %v473_v12 = vmax.f32 %v379_v8, 0.0 }
 0x135   :  { %v1531_v13 = vpop.f32.mrf.mxu0 }
 0x136   :  { %v471_v15 = vmax.f32 %v371_v11, 0.0  ;;  %v499_v19 = vpack.c.bf16 %v473_v12, %v472_v16  ;;  %v392_v23 = vadd.f32 %v1531_v13, %v1972_v41 }
 0x137   :  { %v383_v17 = vpop.f32.mrf.mxu0 }
 0x138   :  { %v498_v18 = vpack.c.bf16 %v471_v15, %v470_v14  ;;  %v384_v21 = vadd.f32 %v1972_v41, %v383_v17  ;;  %v476_v30 = vmax.f32 %v392_v23, 0.0 }
 0x139   :  { %v1532_v20 = vpop.f32.mrf.mxu0 }
 0x13a   :  { %v395_v22 = vadd.f32 %v1532_v20, %v1972_v41  ;;  %1573 = vmatprep.mubr.bf16.mxu1 %v498_v18  ;;  %v474_v28 = vmax.f32 %v384_v21, 0.0 }
 0x13b   :  { %v386_v24 = vpop.f32.mrf.mxu0  ;;  %1574 = vmatmul.mubr.bf16.gmra.mxu1 %v499_v19 }
 0x13c   :  { %v387_v25 = vadd.f32 %v1972_v41, %v386_v24  ;;  %v477_v26 = vmax.f32 %v395_v22, 0.0 }
 0x13d   :  { %v1535_v27 = vpop.f32.mrf.mxu0 }
 0x13e   :  { %v475_v29 = vmax.f32 %v387_v25, 0.0  ;;  %v501_v33 = vpack.c.bf16 %v477_v26, %v476_v30  ;;  %v408_v37 = vadd.f32 %v1535_v27, %v1972_v41  ;;  %v1742_v25 = vld [vmem:[#allocation8] sm:$0xff]   ;;  %v1743_v26 = vld [vmem:[#allocation10 + $0x38] sm:$0xff]   ;;  %v1744_v27 = vld [vmem:[#allocation10 + $0x30] sm:$0xff]  }
 0x13f   :  { %v399_v31 = vpop.f32.mrf.mxu0  ;;  %1611 = vmatprep.subr.bf16.mxu0 %v1742_v25  ;;  %1645 = vmatprep.subr.bf16.mxu1 %v1743_v26  ;;  %v1748_v30 = vld [vmem:[#allocation10 + $0x10] sm:$0xff]  }
 0x140   :  { %v500_v32 = vpack.c.bf16 %v475_v29, %v474_v28  ;;  %v400_v35 = vadd.f32 %v1972_v41, %v399_v31  ;;  %v480_v45 = vmax.f32 %v408_v37, 0.0  ;;  %1612 = vmatpush3.bf16.msra.mxu0 %v1742_v25  ;;  %1646 = vmatpush3.bf16.msra.mxu1 %v1743_v26  ;;  %v1745_v28 = vld [vmem:[#allocation10 + $0x28] sm:$0xff]   ;;  %v1747_v29 = vld [vmem:[#allocation10 + $0x18] sm:$0xff]  }
 0x141   :  { %v1536_v34 = vpop.f32.mrf.mxu0  ;;  %1647 = vmatprep.subr.bf16.mxu1 %v1744_v27  ;;  %v1749_v31 = vld [vmem:[#allocation10 + $0x8] sm:$0xff]  }
 0x142   :  { %v411_v36 = vadd.f32 %v1536_v34, %v1972_v41  ;;  %1577 = vmatprep.mubr.bf16.mxu1 %v500_v32  ;;  %v478_v43 = vmax.f32 %v400_v35, 0.0  ;;  %v2009_v34 = vld [vmem:[%s2124_s4] ss:$0 sm:$0xff] }
 0x143   :  { %v402_v38 = vpop.f32.mrf.mxu0  ;;  %1578 = vmatmul.mubr.bf16.gmra.mxu1 %v501_v33 }
 0x144   :  { %v403_v39 = vadd.f32 %v1972_v41, %v402_v38  ;;  %v481_v40 = vmax.f32 %v411_v36, 0.0  ;;  %1648 = vmatpush3.bf16.msra.mxu1 %v1744_v27 }
 0x145   :  { %v1539_v42 = vpop.f32.mrf.mxu0  ;;  %1649 = vmatprep.subr.bf16.mxu1 %v1745_v28 }
 0x146   :  { %v479_v44 = vmax.f32 %v403_v39, 0.0  ;;  %v503_v48 = vpack.c.bf16 %v481_v40, %v480_v45  ;;  %v424_v52 = vadd.f32 %v1539_v42, %v1972_v41 }
 0x147   :  { %v415_v46 = vpop.f32.mrf.mxu0 }
 0x148   :  { %v502_v47 = vpack.c.bf16 %v479_v44, %v478_v43  ;;  %v416_v50 = vadd.f32 %v1972_v41, %v415_v46  ;;  %v484_v59 = vmax.f32 %v424_v52, 0.0  ;;  %1650 = vmatpush3.bf16.msra.mxu1 %v1745_v28 }
 0x149   :  { %v1540_v49 = vpop.f32.mrf.mxu0 }
 0x14a   :  { %v427_v51 = vadd.f32 %v1540_v49, %v1972_v41  ;;  %1581 = vmatprep.mubr.bf16.mxu1 %v502_v47  ;;  %v482_v57 = vmax.f32 %v416_v50, 0.0 }
 0x14b   :  { %v418_v53 = vpop.f32.mrf.mxu0  ;;  %1582 = vmatmul.mubr.bf16.gmra.mxu1 %v503_v48 }
 0x14c   :  { %v419_v54 = vadd.f32 %v1972_v41, %v418_v53  ;;  %v485_v55 = vmax.f32 %v427_v51, 0.0 }
 0x14d   :  { %v1543_v56 = vpop.f32.mrf.mxu0 }
 0x14e   :  { %v483_v58 = vmax.f32 %v419_v54, 0.0  ;;  %v505_v62 = vpack.c.bf16 %v485_v55, %v484_v59  ;;  %v440_v2 = vadd.f32 %v1543_v56, %v1972_v41 }
 0x14f   :  { %v431_v60 = vpop.f32.mrf.mxu0 }
 0x150   :  { %v504_v61 = vpack.c.bf16 %v483_v58, %v482_v57  ;;  %v432_v0 = vadd.f32 %v1972_v41, %v431_v60  ;;  %v488_v9 = vmax.f32 %v440_v2, 0.0 }
 0x151   :  { %v1544_v63 = vpop.f32.mrf.mxu0 }
 0x152   :  { %v443_v1 = vadd.f32 %v1544_v63, %v1972_v41  ;;  %1585 = vmatprep.mubr.bf16.mxu1 %v504_v61  ;;  %v486_v7 = vmax.f32 %v432_v0, 0.0 }
 0x153   :  { %v434_v3 = vpop.f32.mrf.mxu0  ;;  %1586 = vmatmul.mubr.bf16.gmra.mxu1 %v505_v62 }
 0x154   :  { %v435_v4 = vadd.f32 %v1972_v41, %v434_v3  ;;  %v489_v5 = vmax.f32 %v443_v1, 0.0 }
 0x155   :  { %v1547_v6 = vpop.f32.mrf.mxu0 }
 0x156   :  { %v487_v8 = vmax.f32 %v435_v4, 0.0  ;;  %v507_v12 = vpack.c.bf16 %v489_v5, %v488_v9  ;;  %v456_v16 = vadd.f32 %v1547_v6, %v1972_v41 }
 0x157   :  { %v447_v10 = vpop.f32.mrf.mxu0 }
 0x158   :  { %v506_v11 = vpack.c.bf16 %v487_v8, %v486_v7  ;;  %v448_v14 = vadd.f32 %v1972_v41, %v447_v10  ;;  %v492_v22 = vmax.f32 %v456_v16, 0.0 }
 0x159   :  { %v1548_v13 = vpop.f32.mrf.mxu0 }
 0x15a   :  { %v459_v15 = vadd.f32 %v1548_v13, %v1972_v41  ;;  %1589 = vmatprep.mubr.bf16.mxu1 %v506_v11  ;;  %v490_v20 = vmax.f32 %v448_v14, 0.0 }
 0x15b   :  { %v450_v17 = vpop.f32.mrf.mxu0  ;;  %1590 = vmatmul.mubr.bf16.gmra.mxu1 %v507_v12 }
 0x15c   :  { %v451_v18 = vadd.f32 %v1972_v41, %v450_v17  ;;  %v493_v19 = vmax.f32 %v459_v15, 0.0  ;;  %v1746_v41 = vld [vmem:[#allocation10 + $0x20] sm:$0xff]  }
 0x15d   :  { %1651 = vmatprep.subr.bf16.mxu1 %v1746_v41 }
 0x15e   :  { %v491_v21 = vmax.f32 %v451_v18, 0.0  ;;  %v509_v24 = vpack.c.bf16 %v493_v19, %v492_v22  ;;  %1652 = vmatpush3.bf16.msra.mxu1 %v1746_v41 }
 0x15f   :  { %1653 = vmatprep.subr.bf16.mxu1 %v1747_v29 }
 0x160   :  { %v508_v23 = vpack.c.bf16 %v491_v21, %v490_v20 }
 0x162   :  { %1593 = vmatprep.mubr.bf16.mxu1 %v508_v23  ;;  %1654 = vmatpush3.bf16.msra.mxu1 %v1747_v29 }
 0x163   :  { %1594 = vmatmul.mubr.bf16.gmra.mxu1 %v509_v24  ;;  %1655 = vmatprep.subr.bf16.mxu1 %v1748_v30 }
 0x166   :  { %1656 = vmatpush3.bf16.msra.mxu1 %v1748_v30 }
 0x167   :  { %1657 = vmatprep.subr.bf16.mxu1 %v1749_v31 }
 0x16a   :  { %1658 = vmatpush3.bf16.msra.mxu1 %v1749_v31 }
 0x1eb   :  { %v1567_v32 = vpop.f32.mrf.mxu1 }
 0x1ec   :  { %v624_v38 = vadd.f32 %v1567_v32, %v2009_v34 }
 0x1ed   :  { %v615_v33 = vpop.f32.mrf.mxu1 }
 0x1ee   :  { %v616_v36 = vadd.f32 %v2009_v34, %v615_v33  ;;  %v744_v46 = vmax.f32 %v624_v38, 0.0 }
 0x1ef   :  { %v1568_v35 = vpop.f32.mrf.mxu1 }
 0x1f0   :  { %v627_v37 = vadd.f32 %v1568_v35, %v2009_v34  ;;  %v742_v44 = vmax.f32 %v616_v36, 0.0 }
 0x1f1   :  { %v618_v39 = vpop.f32.mrf.mxu1 }
 0x1f2   :  { %v619_v40 = vadd.f32 %v2009_v34, %v618_v39  ;;  %v745_v42 = vmax.f32 %v627_v37, 0.0 }
 0x1f3   :  { %v1571_v43 = vpop.f32.mrf.mxu1 }
 0x1f4   :  { %v743_v45 = vmax.f32 %v619_v40, 0.0  ;;  %v775_v49 = vpack.c.bf16 %v745_v42, %v744_v46  ;;  %v640_v53 = vadd.f32 %v1571_v43, %v2009_v34 }
 0x1f5   :  { %v631_v47 = vpop.f32.mrf.mxu1 }
 0x1f6   :  { %v774_v48 = vpack.c.bf16 %v743_v45, %v742_v44  ;;  %v632_v51 = vadd.f32 %v2009_v34, %v631_v47  ;;  %v748_v60 = vmax.f32 %v640_v53, 0.0 }
 0x1f7   :  { %v1572_v50 = vpop.f32.mrf.mxu1 }
 0x1f8   :  { %v643_v52 = vadd.f32 %v1572_v50, %v2009_v34  ;;  %1613 = vmatprep.mubr.bf16.mxu0 %v774_v48  ;;  %v746_v58 = vmax.f32 %v632_v51, 0.0 }
 0x1f9   :  { %v634_v54 = vpop.f32.mrf.mxu1  ;;  %1614 = vmatmul.mubr.bf16.vlgmr.msra.gmra.mxu0 %v775_v49 }
 0x1fa   :  { %v635_v55 = vadd.f32 %v2009_v34, %v634_v54  ;;  %v749_v56 = vmax.f32 %v643_v52, 0.0 }
 0x1fb   :  { %v1575_v57 = vpop.f32.mrf.mxu1 }
 0x1fc   :  { %v747_v59 = vmax.f32 %v635_v55, 0.0  ;;  %v777_v63 = vpack.c.bf16 %v749_v56, %v748_v60  ;;  %v656_v3 = vadd.f32 %v1575_v57, %v2009_v34 }
 0x1fd   :  { %v647_v61 = vpop.f32.mrf.mxu1 }
 0x1fe   :  { %v776_v62 = vpack.c.bf16 %v747_v59, %v746_v58  ;;  %v648_v1 = vadd.f32 %v2009_v34, %v647_v61  ;;  %v752_v10 = vmax.f32 %v656_v3, 0.0 }
 0x1ff   :  { %v1576_v0 = vpop.f32.mrf.mxu1 }
 0x200   :  { %v659_v2 = vadd.f32 %v1576_v0, %v2009_v34  ;;  %1617 = vmatprep.mubr.bf16.mxu0 %v776_v62  ;;  %v750_v8 = vmax.f32 %v648_v1, 0.0 }
 0x201   :  { %v650_v4 = vpop.f32.mrf.mxu1  ;;  %1618 = vmatmul.mubr.bf16.gmra.mxu0 %v777_v63 }
 0x202   :  { %v651_v5 = vadd.f32 %v2009_v34, %v650_v4  ;;  %v753_v6 = vmax.f32 %v659_v2, 0.0 }
 0x203   :  { %v1579_v7 = vpop.f32.mrf.mxu1 }
 0x204   :  { %v751_v9 = vmax.f32 %v651_v5, 0.0  ;;  %v779_v13 = vpack.c.bf16 %v753_v6, %v752_v10  ;;  %v672_v17 = vadd.f32 %v1579_v7, %v2009_v34 }
 0x205   :  { %v663_v11 = vpop.f32.mrf.mxu1 }
 0x206   :  { %v778_v12 = vpack.c.bf16 %v751_v9, %v750_v8  ;;  %v664_v15 = vadd.f32 %v2009_v34, %v663_v11  ;;  %v756_v24 = vmax.f32 %v672_v17, 0.0 }
 0x207   :  { %v1580_v14 = vpop.f32.mrf.mxu1 }
 0x208   :  { %v675_v16 = vadd.f32 %v1580_v14, %v2009_v34  ;;  %1621 = vmatprep.mubr.bf16.mxu0 %v778_v12  ;;  %v754_v22 = vmax.f32 %v664_v15, 0.0 }
 0x209   :  { %v666_v18 = vpop.f32.mrf.mxu1  ;;  %1622 = vmatmul.mubr.bf16.gmra.mxu0 %v779_v13 }
 0x20a   :  { %v667_v19 = vadd.f32 %v2009_v34, %v666_v18  ;;  %v757_v20 = vmax.f32 %v675_v16, 0.0 }
 0x20b   :  { %v1583_v21 = vpop.f32.mrf.mxu1 }
 0x20c   :  { %v755_v23 = vmax.f32 %v667_v19, 0.0  ;;  %v781_v27 = vpack.c.bf16 %v757_v20, %v756_v24  ;;  %v688_v30 = vadd.f32 %v1583_v21, %v2009_v34  ;;  %v1750_v19 = vld [vmem:[#allocation10] sm:$0xff]  }
 0x20d   :  { %v679_v25 = vpop.f32.mrf.mxu1  ;;  %1659 = vmatprep.subr.bf16.mxu1 %v1750_v19 }
 0x20e   :  { %v780_v26 = vpack.c.bf16 %v755_v23, %v754_v22  ;;  %v680_v41 = vadd.f32 %v2009_v34, %v679_v25  ;;  %v760_v38 = vmax.f32 %v688_v30, 0.0  ;;  %1660 = vmatpush3.bf16.msra.mxu1 %v1750_v19  ;;  %v2046_v22 = vld [vmem:[%s2126_s6] ss:$0 sm:$0xff] }
 0x20f   :  { %v1584_v28 = vpop.f32.mrf.mxu1 }
 0x210   :  { %v691_v29 = vadd.f32 %v1584_v28, %v2009_v34  ;;  %1625 = vmatprep.mubr.bf16.mxu0 %v780_v26  ;;  %v758_v36 = vmax.f32 %v680_v41, 0.0 }
 0x211   :  { %v682_v31 = vpop.f32.mrf.mxu1  ;;  %1626 = vmatmul.mubr.bf16.gmra.mxu0 %v781_v27 }
 0x212   :  { %v683_v32 = vadd.f32 %v2009_v34, %v682_v31  ;;  %v761_v33 = vmax.f32 %v691_v29, 0.0 }
 0x213   :  { %v1587_v35 = vpop.f32.mrf.mxu1 }
 0x214   :  { %v759_v37 = vmax.f32 %v683_v32, 0.0  ;;  %v783_v42 = vpack.c.bf16 %v761_v33, %v760_v38  ;;  %v704_v46 = vadd.f32 %v1587_v35, %v2009_v34 }
 0x215   :  { %v695_v39 = vpop.f32.mrf.mxu1 }
 0x216   :  { %v782_v40 = vpack.c.bf16 %v759_v37, %v758_v36  ;;  %v696_v44 = vadd.f32 %v2009_v34, %v695_v39  ;;  %v764_v53 = vmax.f32 %v704_v46, 0.0 }
 0x217   :  { %v1588_v43 = vpop.f32.mrf.mxu1 }
 0x218   :  { %v707_v45 = vadd.f32 %v1588_v43, %v2009_v34  ;;  %1629 = vmatprep.mubr.bf16.mxu0 %v782_v40  ;;  %v762_v51 = vmax.f32 %v696_v44, 0.0 }
 0x219   :  { %v698_v47 = vpop.f32.mrf.mxu1  ;;  %1630 = vmatmul.mubr.bf16.gmra.mxu0 %v783_v42 }
 0x21a   :  { %v699_v48 = vadd.f32 %v2009_v34, %v698_v47  ;;  %v765_v49 = vmax.f32 %v707_v45, 0.0 }
 0x21b   :  { %v1591_v50 = vpop.f32.mrf.mxu1 }
 0x21c   :  { %v763_v52 = vmax.f32 %v699_v48, 0.0  ;;  %v785_v56 = vpack.c.bf16 %v765_v49, %v764_v53  ;;  %v720_v60 = vadd.f32 %v1591_v50, %v2009_v34 }
 0x21d   :  { %v711_v54 = vpop.f32.mrf.mxu1 }
 0x21e   :  { %v784_v55 = vpack.c.bf16 %v763_v52, %v762_v51  ;;  %v712_v58 = vadd.f32 %v2009_v34, %v711_v54  ;;  %v768_v3 = vmax.f32 %v720_v60, 0.0 }
 0x21f   :  { %v1592_v57 = vpop.f32.mrf.mxu1 }
 0x220   :  { %v723_v59 = vadd.f32 %v1592_v57, %v2009_v34  ;;  %1633 = vmatprep.mubr.bf16.mxu0 %v784_v55  ;;  %v766_v1 = vmax.f32 %v712_v58, 0.0 }
 0x221   :  { %v714_v61 = vpop.f32.mrf.mxu1  ;;  %1634 = vmatmul.mubr.bf16.gmra.mxu0 %v785_v56 }
 0x222   :  { %v715_v62 = vadd.f32 %v2009_v34, %v714_v61  ;;  %v769_v63 = vmax.f32 %v723_v59, 0.0 }
 0x223   :  { %v1595_v0 = vpop.f32.mrf.mxu1 }
 0x224   :  { %v767_v2 = vmax.f32 %v715_v62, 0.0  ;;  %v787_v6 = vpack.c.bf16 %v769_v63, %v768_v3  ;;  %v736_v10 = vadd.f32 %v1595_v0, %v2009_v34 }
 0x225   :  { %v727_v4 = vpop.f32.mrf.mxu1 }
 0x226   :  { %v786_v5 = vpack.c.bf16 %v767_v2, %v766_v1  ;;  %v728_v8 = vadd.f32 %v2009_v34, %v727_v4  ;;  %v772_v16 = vmax.f32 %v736_v10, 0.0 }
 0x227   :  { %v1596_v7 = vpop.f32.mrf.mxu1 }
 0x228   :  { %v739_v9 = vadd.f32 %v1596_v7, %v2009_v34  ;;  %1637 = vmatprep.mubr.bf16.mxu0 %v786_v5  ;;  %v770_v14 = vmax.f32 %v728_v8, 0.0 }
 0x229   :  { %v730_v11 = vpop.f32.mrf.mxu1  ;;  %1638 = vmatmul.mubr.bf16.gmra.mxu0 %v787_v6 }
 0x22a   :  { %v731_v12 = vadd.f32 %v2009_v34, %v730_v11  ;;  %v773_v13 = vmax.f32 %v739_v9, 0.0 }
 0x22c   :  { %v771_v15 = vmax.f32 %v731_v12, 0.0  ;;  %v789_v18 = vpack.c.bf16 %v773_v13, %v772_v16 }
 0x22e   :  { %v788_v17 = vpack.c.bf16 %v771_v15, %v770_v14 }
 0x230   :  { %1641 = vmatprep.mubr.bf16.mxu0 %v788_v17 }
 0x231   :  { %1642 = vmatmul.mubr.bf16.gmra.mxu0 %v789_v18 }
 0x2b9   :  { %v1615_v20 = vpop.f32.mrf.mxu0 }
 0x2ba   :  { %v904_v25 = vadd.f32 %v1615_v20, %v2046_v22 }
 0x2bb   :  { %v895_v21 = vpop.f32.mrf.mxu0 }
 0x2bc   :  { %v896_v34 = vadd.f32 %v2046_v22, %v895_v21  ;;  %v1024_v31 = vmax.f32 %v904_v25, 0.0 }
 0x2bd   :  { %v1616_v23 = vpop.f32.mrf.mxu0 }
 0x2be   :  { %v907_v24 = vadd.f32 %v1616_v23, %v2046_v22  ;;  %v1022_v29 = vmax.f32 %v896_v34, 0.0 }
 0x2bf   :  { %v898_v26 = vpop.f32.mrf.mxu0 }
 0x2c0   :  { %v899_v27 = vadd.f32 %v2046_v22, %v898_v26  ;;  %v1025_v28 = vmax.f32 %v907_v24, 0.0 }
 0x2c1   :  { %v1619_v41 = vpop.f32.mrf.mxu0 }
 0x2c2   :  { %v1023_v30 = vmax.f32 %v899_v27, 0.0  ;;  %v1055_v35 = vpack.c.bf16 %v1025_v28, %v1024_v31  ;;  %v920_v39 = vadd.f32 %v1619_v41, %v2046_v22 }
 0x2c3   :  { %v911_v32 = vpop.f32.mrf.mxu0 }
 0x2c4   :  { %v1054_v33 = vpack.c.bf16 %v1023_v30, %v1022_v29  ;;  %v912_v37 = vadd.f32 %v2046_v22, %v911_v32  ;;  %v1028_v47 = vmax.f32 %v920_v39, 0.0 }
 0x2c5   :  { %v1620_v36 = vpop.f32.mrf.mxu0 }
 0x2c6   :  { %v923_v38 = vadd.f32 %v1620_v36, %v2046_v22  ;;  %1661 = vmatprep.mubr.bf16.mxu1 %v1054_v33  ;;  %v1026_v45 = vmax.f32 %v912_v37, 0.0 }
 0x2c7   :  { %v914_v40 = vpop.f32.mrf.mxu0  ;;  %1662 = vmatmul.mubr.bf16.vlgmr.msra.gmra.mxu1 %v1055_v35 }
 0x2c8   :  { %v915_v42 = vadd.f32 %v2046_v22, %v914_v40  ;;  %v1029_v43 = vmax.f32 %v923_v38, 0.0 }
 0x2c9   :  { %v1623_v44 = vpop.f32.mrf.mxu0 }
 0x2ca   :  { %v1027_v46 = vmax.f32 %v915_v42, 0.0  ;;  %v1057_v50 = vpack.c.bf16 %v1029_v43, %v1028_v47  ;;  %v936_v54 = vadd.f32 %v1623_v44, %v2046_v22 }
 0x2cb   :  { %v927_v48 = vpop.f32.mrf.mxu0 }
 0x2cc   :  { %v1056_v49 = vpack.c.bf16 %v1027_v46, %v1026_v45  ;;  %v928_v52 = vadd.f32 %v2046_v22, %v927_v48  ;;  %v1032_v61 = vmax.f32 %v936_v54, 0.0 }
 0x2cd   :  { %v1624_v51 = vpop.f32.mrf.mxu0 }
 0x2ce   :  { %v939_v53 = vadd.f32 %v1624_v51, %v2046_v22  ;;  %1665 = vmatprep.mubr.bf16.mxu1 %v1056_v49  ;;  %v1030_v59 = vmax.f32 %v928_v52, 0.0 }
 0x2cf   :  { %v930_v55 = vpop.f32.mrf.mxu0  ;;  %1666 = vmatmul.mubr.bf16.gmra.mxu1 %v1057_v50 }
 0x2d0   :  { %v931_v56 = vadd.f32 %v2046_v22, %v930_v55  ;;  %v1033_v57 = vmax.f32 %v939_v53, 0.0 }
 0x2d1   :  { %v1627_v58 = vpop.f32.mrf.mxu0 }
 0x2d2   :  { %v1031_v60 = vmax.f32 %v931_v56, 0.0  ;;  %v1059_v0 = vpack.c.bf16 %v1033_v57, %v1032_v61  ;;  %v952_v4 = vadd.f32 %v1627_v58, %v2046_v22 }
 0x2d3   :  { %v943_v62 = vpop.f32.mrf.mxu0 }
 0x2d4   :  { %v1058_v63 = vpack.c.bf16 %v1031_v60, %v1030_v59  ;;  %v944_v2 = vadd.f32 %v2046_v22, %v943_v62  ;;  %v1036_v11 = vmax.f32 %v952_v4, 0.0 }
 0x2d5   :  { %v1628_v1 = vpop.f32.mrf.mxu0 }
 0x2d6   :  { %v955_v3 = vadd.f32 %v1628_v1, %v2046_v22  ;;  %1669 = vmatprep.mubr.bf16.mxu1 %v1058_v63  ;;  %v1034_v9 = vmax.f32 %v944_v2, 0.0 }
 0x2d7   :  { %v946_v5 = vpop.f32.mrf.mxu0  ;;  %1670 = vmatmul.mubr.bf16.gmra.mxu1 %v1059_v0 }
 0x2d8   :  { %v947_v6 = vadd.f32 %v2046_v22, %v946_v5  ;;  %v1037_v7 = vmax.f32 %v955_v3, 0.0 }
 0x2d9   :  { %v1631_v8 = vpop.f32.mrf.mxu0 }
 0x2da   :  { %v1035_v10 = vmax.f32 %v947_v6, 0.0  ;;  %v1061_v14 = vpack.c.bf16 %v1037_v7, %v1036_v11  ;;  %v968_v18 = vadd.f32 %v1631_v8, %v2046_v22  ;;  %v2083_v6 = vld [vmem:[%s2128_s8] ss:$0 sm:$0xff]  ;;  %s1886_s8 = smov [#allocation11]  }
 0x2db   :  { %v959_v12 = vpop.f32.mrf.mxu0  ;;  %s1339_s15 = sshll.u32 %s1886_s8, 4  ;;  %s1340_s15 = int_to_ptr.vmem [resolvable:$true] %s1339_s15 }
 0x2dc   :  { %v1060_v13 = vpack.c.bf16 %v1035_v10, %v1034_v9  ;;  %v960_v16 = vadd.f32 %v2046_v22, %v959_v12  ;;  %v1040_v25 = vmax.f32 %v968_v18, 0.0  ;;  %s1851_s16 = scalar_lea.vmem %s1340_s15, 4096  ;;  %p1856_p12 = scmp.lt.s32.totalorder %s1340_s15, %s1340_s15 }
 0x2dd   :  { %v1632_v15 = vpop.f32.mrf.mxu0  ;;  %p1852_p11 = scmp.ne.s32.totalorder %s1340_s15, %s1851_s16  ;;  %p1857_p13 = scmp.lt.s32.totalorder %s1851_s16, %s1851_s16 }
 0x2de   :  { %v971_v17 = vadd.f32 %v1632_v15, %v2046_v22  ;;  %1673 = vmatprep.mubr.bf16.mxu1 %v1060_v13  ;;  %v1038_v34 = vmax.f32 %v960_v16, 0.0 }
 0x2df   :  { %v962_v19 = vpop.f32.mrf.mxu0  ;;  %1674 = vmatmul.mubr.bf16.gmra.mxu1 %v1061_v14  ;;  %p1858_p0 = por %p1857_p13, %p1856_p12 }
 0x2e0   :  { %v963_v20 = vadd.f32 %v2046_v22, %v962_v19  ;;  %v1041_v21 = vmax.f32 %v971_v17, 0.0 }
 0x2e1   :  { %v1635_v23 = vpop.f32.mrf.mxu0  ;;  %p1859_p1 = pnand %p1858_p0, %p1852_p11 }
 0x2e2   :  { %v1039_v24 = vmax.f32 %v963_v20, 0.0  ;;  %v1063_v28 = vpack.c.bf16 %v1041_v21, %v1040_v25  ;;  %v984_v31 = vadd.f32 %v1635_v23, %v2046_v22 }
 0x2e3   :  { %v975_v26 = vpop.f32.mrf.mxu0 }
 0x2e4   :  { %v1062_v27 = vpack.c.bf16 %v1039_v24, %v1038_v34  ;;  %v976_v29 = vadd.f32 %v2046_v22, %v975_v26  ;;  %v1044_v39 = vmax.f32 %v984_v31, 0.0 }
 0x2e5   :  { %v1636_v41 = vpop.f32.mrf.mxu0 }
 0x2e6   :  { %v987_v30 = vadd.f32 %v1636_v41, %v2046_v22  ;;  %1677 = vmatprep.mubr.bf16.mxu1 %v1062_v27  ;;  %v1042_v37 = vmax.f32 %v976_v29, 0.0 }
 0x2e7   :  { %v978_v32 = vpop.f32.mrf.mxu0  ;;  %1678 = vmatmul.mubr.bf16.gmra.mxu1 %v1063_v28 }
 0x2e8   :  { %v979_v33 = vadd.f32 %v2046_v22, %v978_v32  ;;  %v1045_v35 = vmax.f32 %v987_v30, 0.0 }
 0x2e9   :  { %v1639_v36 = vpop.f32.mrf.mxu0 }
 0x2ea   :  { %v1043_v38 = vmax.f32 %v979_v33, 0.0  ;;  %v1065_v43 = vpack.c.bf16 %v1045_v35, %v1044_v39  ;;  %v1000_v47 = vadd.f32 %v1639_v36, %v2046_v22 }
 0x2eb   :  { %v991_v40 = vpop.f32.mrf.mxu0 }
 0x2ec   :  { %v1064_v42 = vpack.c.bf16 %v1043_v38, %v1042_v37  ;;  %v992_v45 = vadd.f32 %v2046_v22, %v991_v40  ;;  %v1048_v54 = vmax.f32 %v1000_v47, 0.0 }
 0x2ed   :  { %v1640_v44 = vpop.f32.mrf.mxu0 }
 0x2ee   :  { %v1003_v46 = vadd.f32 %v1640_v44, %v2046_v22  ;;  %1681 = vmatprep.mubr.bf16.mxu1 %v1064_v42  ;;  %v1046_v52 = vmax.f32 %v992_v45, 0.0 }
 0x2ef   :  { %v994_v48 = vpop.f32.mrf.mxu0  ;;  %1682 = vmatmul.mubr.bf16.gmra.mxu1 %v1065_v43 }
 0x2f0   :  { %v995_v49 = vadd.f32 %v2046_v22, %v994_v48  ;;  %v1049_v50 = vmax.f32 %v1003_v46, 0.0 }
 0x2f1   :  { %v1643_v51 = vpop.f32.mrf.mxu0 }
 0x2f2   :  { %v1047_v53 = vmax.f32 %v995_v49, 0.0  ;;  %v1067_v57 = vpack.c.bf16 %v1049_v50, %v1048_v54  ;;  %v1016_v61 = vadd.f32 %v1643_v51, %v2046_v22 }
 0x2f3   :  { %v1007_v55 = vpop.f32.mrf.mxu0 }
 0x2f4   :  { %v1066_v56 = vpack.c.bf16 %v1047_v53, %v1046_v52  ;;  %v1008_v59 = vadd.f32 %v2046_v22, %v1007_v55  ;;  %v1052_v3 = vmax.f32 %v1016_v61, 0.0 }
 0x2f5   :  { %v1644_v58 = vpop.f32.mrf.mxu0 }
 0x2f6   :  { %v1019_v60 = vadd.f32 %v1644_v58, %v2046_v22  ;;  %1685 = vmatprep.mubr.bf16.mxu1 %v1066_v56  ;;  %v1050_v1 = vmax.f32 %v1008_v59, 0.0 }
 0x2f7   :  { %v1010_v62 = vpop.f32.mrf.mxu0  ;;  %1686 = vmatmul.mubr.bf16.gmra.mxu1 %v1067_v57 }
 0x2f8   :  { %v1011_v63 = vadd.f32 %v2046_v22, %v1010_v62  ;;  %v1053_v0 = vmax.f32 %v1019_v60, 0.0 }
 0x2fa   :  { %v1051_v2 = vmax.f32 %v1011_v63, 0.0  ;;  %v1069_v5 = vpack.c.bf16 %v1053_v0, %v1052_v3 }
 0x2fc   :  { %v1068_v4 = vpack.c.bf16 %v1051_v2, %v1050_v1 }
 0x2fe   :  { %1689 = vmatprep.mubr.bf16.mxu1 %v1068_v4 }
 0x2ff   :  { %1690 = vmatmul.mubr.bf16.gmra.mxu1 %v1069_v5 }
 0x387   :  { %v1663_v7 = vpop.f32.mrf.mxu1 }
 0x388   :  { %v1184_v8 = vadd.f32 %v1663_v7, %v2083_v6 }
 0x389   :  { %v1175_v9 = vpop.f32.mrf.mxu1 }
 0x38a   :  { %1304 = vst [vmem:[#allocation11 + $0x10] sm:$0xff] %v1184_v8  ;;  %v1176_v22 = vadd.f32 %v2083_v6, %v1175_v9 }
 0x38b   :  { %v1664_v10 = vpop.f32.mrf.mxu1 }
 0x38c   :  { %1302 = vst [vmem:[#allocation11] sm:$0xff] %v1176_v22  ;;  %v1187_v11 = vadd.f32 %v1664_v10, %v2083_v6 }
 0x38d   :  { %v1178_v12 = vpop.f32.mrf.mxu1 }
 0x38e   :  { %1305 = vst [vmem:[#allocation11 + $0x18] sm:$0xff] %v1187_v11  ;;  %v1179_v13 = vadd.f32 %v2083_v6, %v1178_v12 }
 0x38f   :  { %v1667_v14 = vpop.f32.mrf.mxu1 }
 0x390   :  { %1303 = vst [vmem:[#allocation11 + $0x8] sm:$0xff] %v1179_v13  ;;  %v1200_v15 = vadd.f32 %v1667_v14, %v2083_v6 }
 0x391   :  { %v1191_v16 = vpop.f32.mrf.mxu1 }
 0x392   :  { %1308 = vst [vmem:[#allocation11 + $0x30] sm:$0xff] %v1200_v15  ;;  %v1192_v17 = vadd.f32 %v2083_v6, %v1191_v16 }
 0x393   :  { %v1668_v18 = vpop.f32.mrf.mxu1 }
 0x394   :  { %1306 = vst [vmem:[#allocation11 + $0x20] sm:$0xff] %v1192_v17  ;;  %v1203_v19 = vadd.f32 %v1668_v18, %v2083_v6 }
 0x395   :  { %v1194_v20 = vpop.f32.mrf.mxu1 }
 0x396   :  { %1309 = vst [vmem:[#allocation11 + $0x38] sm:$0xff] %v1203_v19  ;;  %v1195_v21 = vadd.f32 %v2083_v6, %v1194_v20 }
 0x397   :  { %v1671_v23 = vpop.f32.mrf.mxu1 }
 0x398   :  { %1307 = vst [vmem:[#allocation11 + $0x28] sm:$0xff] %v1195_v21  ;;  %v1216_v34 = vadd.f32 %v1671_v23, %v2083_v6 }
 0x399   :  { %v1207_v24 = vpop.f32.mrf.mxu1 }
 0x39a   :  { %1312 = vst [vmem:[#allocation11 + $0x50] sm:$0xff] %v1216_v34  ;;  %v1208_v25 = vadd.f32 %v2083_v6, %v1207_v24 }
 0x39b   :  { %v1672_v26 = vpop.f32.mrf.mxu1 }
 0x39c   :  { %1310 = vst [vmem:[#allocation11 + $0x40] sm:$0xff] %v1208_v25  ;;  %v1219_v27 = vadd.f32 %v1672_v26, %v2083_v6 }
 0x39d   :  { %v1210_v28 = vpop.f32.mrf.mxu1 }
 0x39e   :  { %1313 = vst [vmem:[#allocation11 + $0x58] sm:$0xff] %v1219_v27  ;;  %v1211_v41 = vadd.f32 %v2083_v6, %v1210_v28 }
 0x39f   :  { %v1675_v29 = vpop.f32.mrf.mxu1 }
 0x3a0   :  { %1311 = vst [vmem:[#allocation11 + $0x48] sm:$0xff] %v1211_v41  ;;  %v1232_v30 = vadd.f32 %v1675_v29, %v2083_v6 }
 0x3a1   :  { %v1223_v31 = vpop.f32.mrf.mxu1 }
 0x3a2   :  { %1316 = vst [vmem:[#allocation11 + $0x70] sm:$0xff] %v1232_v30  ;;  %v1224_v32 = vadd.f32 %v2083_v6, %v1223_v31 }
 0x3a3   :  { %v1676_v33 = vpop.f32.mrf.mxu1 }
 0x3a4   :  { %1314 = vst [vmem:[#allocation11 + $0x60] sm:$0xff] %v1224_v32  ;;  %v1235_v35 = vadd.f32 %v1676_v33, %v2083_v6 }
 0x3a5   :  { %v1226_v36 = vpop.f32.mrf.mxu1 }
 0x3a6   :  { %1317 = vst [vmem:[#allocation11 + $0x78] sm:$0xff] %v1235_v35  ;;  %v1227_v37 = vadd.f32 %v2083_v6, %v1226_v36 }
 0x3a7   :  { %v1679_v38 = vpop.f32.mrf.mxu1 }
 0x3a8   :  { %1315 = vst [vmem:[#allocation11 + $0x68] sm:$0xff] %v1227_v37  ;;  %v1248_v39 = vadd.f32 %v1679_v38, %v2083_v6 }
 0x3a9   :  { %v1239_v40 = vpop.f32.mrf.mxu1 }
 0x3aa   :  { %1320 = vst [vmem:[#allocation11 + $0x90] sm:$0xff] %v1248_v39  ;;  %v1240_v42 = vadd.f32 %v2083_v6, %v1239_v40 }
 0x3ab   :  { %v1680_v43 = vpop.f32.mrf.mxu1 }
 0x3ac   :  { %1318 = vst [vmem:[#allocation11 + $0x80] sm:$0xff] %v1240_v42  ;;  %v1251_v44 = vadd.f32 %v1680_v43, %v2083_v6 }
 0x3ad   :  { %v1242_v45 = vpop.f32.mrf.mxu1 }
 0x3ae   :  { %1321 = vst [vmem:[#allocation11 + $0x98] sm:$0xff] %v1251_v44  ;;  %v1243_v46 = vadd.f32 %v2083_v6, %v1242_v45 }
 0x3af   :  { %v1683_v47 = vpop.f32.mrf.mxu1 }
 0x3b0   :  { %1319 = vst [vmem:[#allocation11 + $0x88] sm:$0xff] %v1243_v46  ;;  %v1264_v48 = vadd.f32 %v1683_v47, %v2083_v6 }
 0x3b1   :  { %v1255_v49 = vpop.f32.mrf.mxu1 }
 0x3b2   :  { %1324 = vst [vmem:[#allocation11 + $0xb0] sm:$0xff] %v1264_v48  ;;  %v1256_v50 = vadd.f32 %v2083_v6, %v1255_v49 }
 0x3b3   :  { %v1684_v51 = vpop.f32.mrf.mxu1 }
 0x3b4   :  { %1322 = vst [vmem:[#allocation11 + $0xa0] sm:$0xff] %v1256_v50  ;;  %v1267_v52 = vadd.f32 %v1684_v51, %v2083_v6 }
 0x3b5   :  { %v1258_v53 = vpop.f32.mrf.mxu1 }
 0x3b6   :  { %1325 = vst [vmem:[#allocation11 + $0xb8] sm:$0xff] %v1267_v52  ;;  %v1259_v54 = vadd.f32 %v2083_v6, %v1258_v53 }
 0x3b7   :  { %v1687_v55 = vpop.f32.mrf.mxu1 }
 0x3b8   :  { %1323 = vst [vmem:[#allocation11 + $0xa8] sm:$0xff] %v1259_v54  ;;  %v1280_v56 = vadd.f32 %v1687_v55, %v2083_v6 }
 0x3b9   :  { %v1271_v57 = vpop.f32.mrf.mxu1 }
 0x3ba   :  { %1328 = vst [vmem:[#allocation11 + $0xd0] sm:$0xff] %v1280_v56  ;;  %v1272_v58 = vadd.f32 %v2083_v6, %v1271_v57 }
 0x3bb   :  { %v1688_v59 = vpop.f32.mrf.mxu1 }
 0x3bc   :  { %1326 = vst [vmem:[#allocation11 + $0xc0] sm:$0xff] %v1272_v58  ;;  %v1283_v60 = vadd.f32 %v1688_v59, %v2083_v6 }
 0x3bd   :  { %v1274_v61 = vpop.f32.mrf.mxu1 }
 0x3be   :  { %1329 = vst [vmem:[#allocation11 + $0xd8] sm:$0xff] %v1283_v60  ;;  %v1275_v62 = vadd.f32 %v2083_v6, %v1274_v61 }
 0x3bf   :  { %v1691_v63 = vpop.f32.mrf.mxu1 }
 0x3c0   :  { %1327 = vst [vmem:[#allocation11 + $0xc8] sm:$0xff] %v1275_v62  ;;  %v1296_v0 = vadd.f32 %v1691_v63, %v2083_v6 }
 0x3c1   :  { %v1287_v1 = vpop.f32.mrf.mxu1 }
 0x3c2   :  { %1332 = vst [vmem:[#allocation11 + $0xf0] sm:$0xff] %v1296_v0  ;;  %v1288_v2 = vadd.f32 %v2083_v6, %v1287_v1 }
 0x3c3   :  { %v1692_v3 = vpop.f32.mrf.mxu1 }
 0x3c4   :  { %1330 = vst [vmem:[#allocation11 + $0xe0] sm:$0xff] %v1288_v2  ;;  %v1299_v4 = vadd.f32 %v1692_v3, %v2083_v6 }
 0x3c5   :  { %v1290_v5 = vpop.f32.mrf.mxu1 }
 0x3c6   :  { %1333 = vst [vmem:[#allocation11 + $0xf8] sm:$0xff] %v1299_v4  ;;  %v1291_v7 = vadd.f32 %v2083_v6, %v1290_v5 }
 0x3c8   :  { %1331 = vst [vmem:[#allocation11 + $0xe8] sm:$0xff] %v1291_v7 }
 0x3c9   :  { %1862 = shalt.err (!%p1859_p1)
}
 0x3ca   :  { %s1887_s17 = smov 128   ;;  %s1888_s18 = smov 8  }
 0x3cb   :  { %1345 = dma.vmem_to_hbm [thread:$0]  %s1340_s15, 4096, %s2129_s9, [#allocation4], %s1887_s17, %s1887_s17, %s1888_s18  }
 0x3cc   :  { %1877 = dma.done.wait [#allocation4], 4096  }
 0x3cd   :  { %1878 = vsyncadd [#allocation4], 4294963200 }
 0x3ce   :  { %1349 = vsyncpa [#allocation3], 1 }
 0x3cf   :  { %1350 = vsyncpa [#allocation6], 1 }
 0x3d0   :  { %1351 = vsyncpa [#allocation9], 1 }
 0x3d1   :  { %1352 = vsyncpa [#allocation4], 1 }

</bundles_post_ra>
